<compile_context>
chip_gen: v7x
topology: tpu7x:2x2x1
jax: 0.10.0
libtpu: 0.0.40
codegen_flags: <defaults>
</compile_context>

<pallas_src>
import functools

import jax
import jax.numpy as jnp
from jax.experimental import pallas as pl
from jax.experimental.pallas import tpu as pltpu

BN_EPS = 1e-5
LANE = 128

# conv2 tap order (kh*3 + kw) matching the in-kernel concat-K operand order:
#   [y_ee, y_eo, sh_w(y_eo), y_oe, sh_h(y_oe), y_oo, sh_w(y_oo), sh_h(y_oo), sh_hw(y_oo)]
_CONV2_TAP_ORDER = (4, 5, 3, 7, 1, 8, 6, 2, 0)


def _pad_to(v, mult):
    return ((v + mult - 1) // mult) * mult


# ----------------------------------------------------------------------------
# In-kernel helpers
# ----------------------------------------------------------------------------
def _erf_f32(x):
    """f32 erf via XLA's rational polynomial; reciprocal routed to the EUP."""
    alpha = (0.00022905065861350646, 0.0034082910107109506,
             0.050955695062380861, 0.18520832239976145, 1.128379143519084)
    beta = (-1.1791602954361697e-07, 2.3547966471313185e-05,
            0.0010179625278914885, 0.014070470171167667,
            0.11098505178285362, 0.49746925110067538, 1.0)
    x = jnp.clip(x, -4.0, 4.0)
    x2 = x * x
    p = jnp.full_like(x2, alpha[0])
    for c in alpha[1:]:
        p = p * x2 + c
    q = jnp.full_like(x2, beta[0])
    for c in beta[1:]:
        q = q * x2 + c
    return x * p * pl.reciprocal(q, approx=True)


def _gelu_exact(x):
    # Exact (erf) GELU to match nn.GELU(); kept f32 (v5e has no bf16 VPU/EUP).
    return 0.5 * x * (1.0 + _erf_f32(x * 0.7071067811865476))


# ----------------------------------------------------------------------------
# Fused kernel.  Spatial parities of the input are pre-split in the wrapper:
#   xp rows [0:M)   = x[2ho  , 2wo  ]   ("ee")
#   xp rows [M:2M)  = x[2ho  , 2wo+1]   ("eo")
#   xp rows [2M:3M) = x[2ho+1, 2wo  ]   ("oe")
#   xp rows [3M:4M) = x[2ho+1, 2wo+1]   ("oo")        M = Ho*Wo, row = ho*Wo+wo
# ----------------------------------------------------------------------------
def _fused_block_kernel(wo, m, cm, co,
                        xp_ref, w1d_ref, w2_ref, w3_ref, tb_ref, o_ref):
    f32 = jnp.float32
    bf16 = jnp.bfloat16

    x_all = xp_ref[0]                                  # (4M, Ci) bf16

    # --- conv1 (1x1) fused with the stride-2 1x1 down path (N = Cm+Co) ------
    y1d = jnp.dot(x_all, w1d_ref[...], preferred_element_type=f32)
    y1d = y1d + tb_ref[0:1, :]                         # (4M, Cm+Co) f32

    yd = y1d[0:m, cm:cm + co]                          # down path (ee parity only)
    y1 = y1d[:, 0:cm]                                  # conv path (4M, Cm) f32

    y_ee = y1[0 * m:1 * m]                             # y1[2ho  , 2wo  ]
    y_eo = y1[1 * m:2 * m]                             # y1[2ho  , 2wo+1]
    y_oe = y1[2 * m:3 * m]                             # y1[2ho+1, 2wo  ]
    y_oo = y1[3 * m:4 * m]                             # y1[2ho+1, 2wo+1]

    # Border masks for the zero padding (pad=1) of conv2.
    row = jax.lax.broadcasted_iota(jnp.int32, (m, 1), 0)
    first_col = (row % wo) == 0                        # wo == 0
    first_row = row < wo                               # ho == 0

    def sh_w(a):                                       # a[ho, wo-1], zero at wo == 0
        return jnp.where(first_col, 0.0, pltpu.roll(a, shift=1, axis=0))

    def sh_h(a):                                       # a[ho-1, wo], zero at ho == 0
        return jnp.where(first_row, 0.0, pltpu.roll(a, shift=wo, axis=0))

    def sh_hw(a):                                      # a[ho-1, wo-1], zero at border
        return jnp.where(first_row | first_col, 0.0,
                         pltpu.roll(a, shift=wo + 1, axis=0))

    # --- conv2: 3x3 / stride 2 / pad 1 as ONE concatenated-K MXU matmul -----
    # Operand block order must match _CONV2_TAP_ORDER used at pack time.
    a_cat = jnp.concatenate(
        [y_ee, y_eo, sh_w(y_eo), y_oe, sh_h(y_oe),
         y_oo, sh_w(y_oo), sh_h(y_oo), sh_hw(y_oo)],
        axis=1).astype(bf16)                           # (M, 9*Cm) bf16, single cast
    y2 = jnp.dot(a_cat, w2_ref[...],
                 preferred_element_type=f32) + tb_ref[1:2, 0:cm]     # (M, Cm) f32

    # --- conv3 (1x1) + folded BN --------------------------------------------
    y3 = jnp.dot(y2.astype(bf16), w3_ref[...],
                 preferred_element_type=f32) + tb_ref[2:3, 0:co]     # (M, Co) f32

    # --- GELU + residual, lane-dense (Co = 128) f32 store --------------------
    o_ref[0] = _gelu_exact(y3) + yd


# ----------------------------------------------------------------------------
# Parameter construction (deterministic, synthetic)
# ----------------------------------------------------------------------------
def init_raw_params(key, in_channels, out_channels, base_width=64):
    mid_channels = int(out_channels * (base_width / 64))
    ks = iter(jax.random.split(key, 32))

    def conv(shape):
        return 0.2 * jax.random.normal(next(ks), shape, jnp.float32)

    def bias(c):
        return 0.1 * jax.random.normal(next(ks), (c,), jnp.float32)

    def bn(c):
        gamma = 1.0 + 0.1 * jax.random.normal(next(ks), (c,), jnp.float32)
        beta = 0.1 * jax.random.normal(next(ks), (c,), jnp.float32)
        mean = 0.1 * jax.random.normal(next(ks), (c,), jnp.float32)
        var = jax.random.uniform(next(ks), (c,), jnp.float32, 0.5, 1.5)
        return (gamma, beta, mean, var)

    raw = {
        # down layer: Conv2d(in, out, k=1, stride=2) + BN(out)
        "wd": conv((out_channels, in_channels, 1, 1)), "bd": bias(out_channels),
        "bnd": bn(out_channels),
        # conv path
        "w1": conv((mid_channels, in_channels, 1, 1)), "b1": bias(mid_channels),
        "bn1": bn(mid_channels),
        "w2": conv((mid_channels, mid_channels, 3, 3)), "b2": bias(mid_channels),
        "bn2": bn(mid_channels),
        "w3": conv((out_channels, mid_channels, 1, 1)), "b3": bias(out_channels),
        "bn3": bn(out_channels),
    }
    return raw, mid_channels


def _fold_bn(conv_b, gamma, beta, mean, var):
    s = gamma / jnp.sqrt(var + BN_EPS)      # BN scale (folded into weights)
    t = (conv_b - mean) * s + beta          # remaining per-channel shift
    return s, t


def _pad2(a, rows, cols):
    r, c = a.shape
    return jnp.pad(a, ((0, rows - r), (0, cols - c)))


def pack_params(raw):
    """PyTorch-layout weights -> lane-padded bf16 matmul weights with the BN
    scale folded in, plus one stacked f32 per-channel shift (eval-mode BN).
    conv1 and the down path share one weight [w1|wd]; conv2 taps are stacked
    along K in _CONV2_TAP_ORDER for the concat-K matmul."""
    cin = raw["w1"].shape[1]
    cmid = raw["w1"].shape[0]
    cout = raw["w3"].shape[0]
    ci, cm, co = (_pad_to(c, LANE) for c in (cin, cmid, cout))
    cmax = cm + co

    def fold_1x1(w, b, bn, k_pad, n_pad):
        s, t = _fold_bn(b, *bn)
        wm = w[:, :, 0, 0].T * s[None, :]                       # (Cin, Cout)*scale
        return _pad2(wm, k_pad, n_pad), _pad2(t[None, :], 1, n_pad)

    w1, t1 = fold_1x1(raw["w1"], raw["b1"], raw["bn1"], ci, cm)
    wd, td = fold_1x1(raw["wd"], raw["bd"], raw["bnd"], ci, co)
    w3, t3 = fold_1x1(raw["w3"], raw["b3"], raw["bn3"], cm, co)

    s2, t2 = _fold_bn(raw["b2"], *raw["bn2"])
    taps = []
    for tap in _CONV2_TAP_ORDER:
        kh, kw = divmod(tap, 3)
        wt = raw["w2"][:, :, kh, kw].T * s2[None, :]            # (Cmid_in, Cmid_out)
        taps.append(_pad2(wt, cm, cm))

    p = {
        "w1d": jnp.concatenate([w1, wd], axis=1).astype(jnp.bfloat16),   # (Ci, Cm+Co)
        "w2": jnp.concatenate(taps, axis=0).astype(jnp.bfloat16),        # (9*Cm, Cm)
        "w3": w3.astype(jnp.bfloat16),                                   # (Cm, Co)
        "tb": jnp.concatenate(
            [jnp.concatenate([t1, td], axis=1),                          # [t1|td]
             _pad2(t2[None, :], 1, cmax),                                # t2
             _pad2(t3, 1, cmax)],                                        # t3
            axis=0).astype(jnp.float32),                                 # (3, Cm+Co)
    }
    return p


# ----------------------------------------------------------------------------
# Forward pass (single fused Pallas call)
# ----------------------------------------------------------------------------
@functools.partial(jax.jit, static_argnames=("cout",))
def conv_encoder_block(x_nchw, p, *, cout):
    n, cin, h, w = x_nchw.shape
    assert h % 2 == 0 and w % 2 == 0, "even spatial dims required"
    ho, wo = h // 2, w // 2
    m = ho * wo
    ci = p["w1d"].shape[0]
    cm, co = p["w3"].shape

    # NCHW -> NHWC, zero-pad channels to the lane width, split spatial parities
    # (even/odd row x even/odd col) so every stride-2 tap becomes a plain row
    # range inside the kernel, and cast to bf16 for the MXU.
    # TODO(synk): do the parity split / channel pad / bf16 cast in-kernel from
    # NHWC to avoid this extra HBM pass over the input on mem-bound chips.
    x = jnp.transpose(x_nchw, (0, 2, 3, 1)).astype(jnp.float32)
    x = jnp.pad(x, ((0, 0), (0, 0), (0, 0), (0, ci - cin)))
    x = x.reshape(n, ho, 2, wo, 2, ci).transpose(0, 2, 4, 1, 3, 5)
    xp = x.reshape(n, 4 * m, ci).astype(jnp.bfloat16)

    kernel = functools.partial(_fused_block_kernel, wo, m, cm, co)

    # VMEM budget from real residents: weights single-buffered (constant
    # index_maps), xp/out blocks double-buffered, plus in-kernel intermediates;
    # +50% slack, floored at 16 MiB and capped below v7x's 64 MiB physical VMEM.
    w_bytes = (p["w1d"].size + p["w2"].size + p["w3"].size) * 2 + p["tb"].size * 4
    xp_blk = 4 * m * ci * 2                     # bf16 input block
    out_blk = m * co * 4                        # f32 output block
    inter = (4 * m * (cm + co) * 4              # y1d (f32)
             + 9 * m * cm * 2                   # a_cat (bf16)
             + m * cm * 4                       # y2 (f32)
             + 3 * m * co * 4)                  # y3 / yd / gelu (f32)
    vmem_limit = int(min(max(1.5 * (w_bytes + 2 * (xp_blk + out_blk) + inter),
                             16 << 20), 56 << 20))

    out = pl.pallas_call(
        kernel,
        out_shape=jax.ShapeDtypeStruct((n, m, co), jnp.float32),
        grid=(n,),
        in_specs=[
            pl.BlockSpec((1, 4 * m, ci), lambda i: (i, 0, 0)),     # xp (parities)
            pl.BlockSpec((ci, cm + co), lambda i: (0, 0)),         # [w1 | wd]
            pl.BlockSpec((9 * cm, cm), lambda i: (0, 0)),          # w2 concat-K taps
            pl.BlockSpec((cm, co), lambda i: (0, 0)),              # w3
            pl.BlockSpec((3, cm + co), lambda i: (0, 0)),          # stacked biases
        ],
        out_specs=pl.BlockSpec((1, m, co), lambda i: (i, 0, 0)),
        compiler_params=pltpu.CompilerParams(
            dimension_semantics=("parallel",),                     # v7x: 2 TCs
            vmem_limit_bytes=vmem_limit),
    )(xp, p["w1d"], p["w2"], p["w3"], p["tb"])

    out = out.reshape(n, ho, wo, co)[..., :cout]
    # TODO(synk): emit NHWC (and bf16) directly if the consumer allows; NCHW
    # f32 kept to match the PyTorch module's interface.
    return jnp.transpose(out, (0, 3, 1, 2))


# ----------------------------------------------------------------------------
# Pure-JAX f32 reference (for self-check)
# ----------------------------------------------------------------------------
def reference(x_nchw, raw):
    def conv(x, w, b, stride, pad):
        y = jax.lax.conv_general_dilated(
            x, w, (stride, stride), [(pad, pad), (pad, pad)],
            dimension_numbers=("NCHW", "OIHW", "NCHW"))
        return y + b[None, :, None, None]

    def bn(x, stats):
        g, be, mn, v = stats
        s = g / jnp.sqrt(v + BN_EPS)
        return x * s[None, :, None, None] + (be - mn * s)[None, :, None, None]

    _x = bn(conv(x_nchw, raw["wd"], raw["bd"], 2, 0), raw["bnd"])
    h = bn(conv(x_nchw, raw["w1"], raw["b1"], 1, 0), raw["bn1"])
    h = bn(conv(h, raw["w2"], raw["b2"], 2, 1), raw["bn2"])
    h = bn(conv(h, raw["w3"], raw["b3"], 1, 0), raw["bn3"])
    h = jax.nn.gelu(h, approximate=False)
    return _x + h


# ----------------------------------------------------------------------------
if __name__ == "__main__":
    key = jax.random.PRNGKey(0)
    k_param, k_x = jax.random.split(key)

    N, Cin, H, W = 2, 4, 16, 16
    Cout = 8

    raw, _ = init_raw_params(k_param, Cin, Cout)
    params = pack_params(raw)

    x = jax.random.normal(k_x, (N, Cin, H, W), jnp.float32)

    out = conv_encoder_block(x, params, cout=Cout)
    out = jax.block_until_ready(out)

    ref = reference(x, raw)
    assert out.shape == ref.shape == (N, Cout, H // 2, W // 2), out.shape
    # bf16 MXU operands widen the tolerance vs the f32 reference; structural
    # bugs produce errors orders of magnitude larger.
    assert jnp.allclose(out, ref, atol=3e-2, rtol=3e-2), (
        float(jnp.max(jnp.abs(out - ref))))

    print("KERNEL_OK")
</pallas_src>

<mosaic_0001>
module attributes {stable_mosaic.version = 11 : i64} {
  func.func @_fused_block_kernel(%arg0: i32, %arg1: memref<1x256x128xbf16, #tpu.memory_space<vmem>>, %arg2: memref<128x256xbf16, #tpu.memory_space<vmem>>, %arg3: memref<1152x128xbf16, #tpu.memory_space<vmem>>, %arg4: memref<128x128xbf16, #tpu.memory_space<vmem>>, %arg5: memref<3x256xf32, #tpu.memory_space<vmem>>, %arg6: memref<1x64x128xf32, #tpu.memory_space<vmem>>) attributes {dimension_semantics = [#tpu.dimension_semantics<parallel>], iteration_bounds = array<i64: 2>, scalar_prefetch = 0 : i64, scratch_operands = 0 : i64, tpu.core_type = #tpu.core_type<tc>, window_params = [{transform_indices = @transform_0, window_bounds = array<i64: 1, 256, 128>}, {pipeline_mode = #tpu.pipeline_mode<synchronous>, transform_indices = @transform_1, window_bounds = array<i64: 128, 256>}, {pipeline_mode = #tpu.pipeline_mode<synchronous>, transform_indices = @transform_2, window_bounds = array<i64: 1152, 128>}, {pipeline_mode = #tpu.pipeline_mode<synchronous>, transform_indices = @transform_3, window_bounds = array<i64: 128, 128>}, {pipeline_mode = #tpu.pipeline_mode<synchronous>, transform_indices = @transform_4, window_bounds = array<i64: 3, 256>}, {transform_indices = @transform_5, window_bounds = array<i64: 1, 64, 128>}]} {
    %c0 = arith.constant 0 : index
    %c0_0 = arith.constant 0 : index
    %c0_1 = arith.constant 0 : index
    %0 = vector.load %arg1[%c0, %c0_0, %c0_1] : memref<1x256x128xbf16, #tpu.memory_space<vmem>>, vector<1x256x128xbf16>
    %1 = vector.shape_cast %0 : vector<1x256x128xbf16> to vector<256x128xbf16>
    %c0_2 = arith.constant 0 : index
    %c0_3 = arith.constant 0 : index
    %2 = vector.load %arg2[%c0_2, %c0_3] : memref<128x256xbf16, #tpu.memory_space<vmem>>, vector<128x256xbf16>
    %cst = arith.constant dense<0.000000e+00> : vector<256x256xf32>
    %3 = tpu.matmul %1, %2, %cst {dimension_numbers = #tpu.dot_dimension_numbers<[1], [0], [0], [1], [0, 0, 1, 1], [], []>} : vector<256x128xbf16>, vector<128x256xbf16>, vector<256x256xf32> -> vector<256x256xf32>
    %c0_4 = arith.constant 0 : index
    %c0_5 = arith.constant 0 : index
    %4 = vector.load %arg5[%c0_4, %c0_5] : memref<3x256xf32, #tpu.memory_space<vmem>>, vector<1x256xf32>
    %5 = vector.broadcast %4 : vector<1x256xf32> to vector<256x256xf32>
    %6 = arith.addf %3, %5 : vector<256x256xf32>
    %7 = vector.extract_strided_slice %6 {offsets = [0, 128], sizes = [64, 128], strides = [1, 1]} : vector<256x256xf32> to vector<64x128xf32>
    %8 = vector.extract_strided_slice %6 {offsets = [0, 0], sizes = [256, 128], strides = [1, 1]} : vector<256x256xf32> to vector<256x128xf32>
    %9 = vector.extract_strided_slice %8 {offsets = [0, 0], sizes = [64, 128], strides = [1, 1]} : vector<256x128xf32> to vector<64x128xf32>
    %10 = vector.extract_strided_slice %8 {offsets = [64, 0], sizes = [64, 128], strides = [1, 1]} : vector<256x128xf32> to vector<64x128xf32>
    %11 = vector.extract_strided_slice %8 {offsets = [128, 0], sizes = [64, 128], strides = [1, 1]} : vector<256x128xf32> to vector<64x128xf32>
    %12 = vector.extract_strided_slice %8 {offsets = [192, 0], sizes = [64, 128], strides = [1, 1]} : vector<256x128xf32> to vector<64x128xf32>
    %13 = tpu.iota {dimensions = array<i32: 0>} : vector<64x1xi32>
    %c8_i32 = arith.constant 8 : i32
    %c0_i32 = arith.constant 0 : i32
    %14 = arith.cmpi eq, %c8_i32, %c0_i32 : i32
    %c1_i32 = arith.constant 1 : i32
    %15 = arith.select %14, %c1_i32, %c8_i32 : i32
    %16 = vector.broadcast %15 : i32 to vector<64x1xi32>
    %17 = arith.remsi %13, %16 : vector<64x1xi32>
    %c0_i32_6 = arith.constant 0 : i32
    %18 = vector.broadcast %c0_i32_6 : i32 to vector<64x1xi32>
    %19 = arith.cmpi ne, %17, %18 : vector<64x1xi32>
    %c0_i32_7 = arith.constant 0 : i32
    %20 = vector.broadcast %c0_i32_7 : i32 to vector<64x1xi32>
    %21 = arith.cmpi slt, %17, %20 : vector<64x1xi32>
    %c0_i32_8 = arith.constant 0 : i32
    %22 = arith.cmpi slt, %15, %c0_i32_8 : i32
    %23 = vector.broadcast %22 : i1 to vector<64x1xi1>
    %24 = vector.broadcast %23 : vector<64x1xi1> to vector<64x1xi1>
    %25 = arith.xori %21, %24 : vector<64x1xi1>
    %26 = arith.andi %25, %19 : vector<64x1xi1>
    %27 = vector.broadcast %15 : i32 to vector<64x1xi32>
    %28 = arith.addi %17, %27 : vector<64x1xi32>
    %29 = arith.select %26, %28, %17 : vector<64x1xi1>, vector<64x1xi32>
    %c0_i32_9 = arith.constant 0 : i32
    %30 = vector.broadcast %c0_i32_9 : i32 to vector<64x1xi32>
    %31 = arith.cmpi eq, %29, %30 : vector<64x1xi32>
    %c8_i32_10 = arith.constant 8 : i32
    %32 = vector.broadcast %c8_i32_10 : i32 to vector<64x1xi32>
    %33 = arith.cmpi slt, %13, %32 : vector<64x1xi32>
    %c1_i32_11 = arith.constant 1 : i32
    %34 = tpu.dynamic_rotate %10 by %c1_i32_11 dim 0 : vector<64x128xf32>, i32 -> vector<64x128xf32>
    %cst_12 = arith.constant 0.000000e+00 : f32
    %35 = vector.shape_cast %31 : vector<64x1xi1> to vector<64x1xi1>
    %36 = vector.broadcast %35 : vector<64x1xi1> to vector<64x128xi1>
    %37 = vector.broadcast %cst_12 : f32 to vector<64x128xf32>
    %38 = arith.select %36, %37, %34 : vector<64x128xi1>, vector<64x128xf32>
    %c8_i32_13 = arith.constant 8 : i32
    %39 = tpu.dynamic_rotate %11 by %c8_i32_13 dim 0 : vector<64x128xf32>, i32 -> vector<64x128xf32>
    %cst_14 = arith.constant 0.000000e+00 : f32
    %40 = vector.shape_cast %33 : vector<64x1xi1> to vector<64x1xi1>
    %41 = vector.broadcast %40 : vector<64x1xi1> to vector<64x128xi1>
    %42 = vector.broadcast %cst_14 : f32 to vector<64x128xf32>
    %43 = arith.select %41, %42, %39 : vector<64x128xi1>, vector<64x128xf32>
    %c1_i32_15 = arith.constant 1 : i32
    %44 = tpu.dynamic_rotate %12 by %c1_i32_15 dim 0 : vector<64x128xf32>, i32 -> vector<64x128xf32>
    %cst_16 = arith.constant 0.000000e+00 : f32
    %45 = vector.shape_cast %31 : vector<64x1xi1> to vector<64x1xi1>
    %46 = vector.broadcast %45 : vector<64x1xi1> to vector<64x128xi1>
    %47 = vector.broadcast %cst_16 : f32 to vector<64x128xf32>
    %48 = arith.select %46, %47, %44 : vector<64x128xi1>, vector<64x128xf32>
    %c8_i32_17 = arith.constant 8 : i32
    %49 = tpu.dynamic_rotate %12 by %c8_i32_17 dim 0 : vector<64x128xf32>, i32 -> vector<64x128xf32>
    %cst_18 = arith.constant 0.000000e+00 : f32
    %50 = vector.shape_cast %33 : vector<64x1xi1> to vector<64x1xi1>
    %51 = vector.broadcast %50 : vector<64x1xi1> to vector<64x128xi1>
    %52 = vector.broadcast %cst_18 : f32 to vector<64x128xf32>
    %53 = arith.select %51, %52, %49 : vector<64x128xi1>, vector<64x128xf32>
    %54 = arith.ori %33, %31 : vector<64x1xi1>
    %c9_i32 = arith.constant 9 : i32
    %55 = tpu.dynamic_rotate %12 by %c9_i32 dim 0 : vector<64x128xf32>, i32 -> vector<64x128xf32>
    %cst_19 = arith.constant 0.000000e+00 : f32
    %56 = vector.shape_cast %54 : vector<64x1xi1> to vector<64x1xi1>
    %57 = vector.broadcast %56 : vector<64x1xi1> to vector<64x128xi1>
    %58 = vector.broadcast %cst_19 : f32 to vector<64x128xf32>
    %59 = arith.select %57, %58, %55 : vector<64x128xi1>, vector<64x128xf32>
    %60 = tpu.concatenate %9, %10, %38, %11, %43, %12, %48, %53, %59 in 1 : vector<64x128xf32>, vector<64x128xf32>, vector<64x128xf32>, vector<64x128xf32>, vector<64x128xf32>, vector<64x128xf32>, vector<64x128xf32>, vector<64x128xf32>, vector<64x128xf32> -> vector<64x1152xf32>
    %61 = arith.truncf %60 : vector<64x1152xf32> to vector<64x1152xbf16>
    %c0_20 = arith.constant 0 : index
    %c0_21 = arith.constant 0 : index
    %62 = vector.load %arg3[%c0_20, %c0_21] : memref<1152x128xbf16, #tpu.memory_space<vmem>>, vector<1152x128xbf16>
    %cst_22 = arith.constant dense<0.000000e+00> : vector<64x128xf32>
    %63 = tpu.matmul %61, %62, %cst_22 {dimension_numbers = #tpu.dot_dimension_numbers<[1], [0], [0], [1], [0, 0, 1, 1], [], []>} : vector<64x1152xbf16>, vector<1152x128xbf16>, vector<64x128xf32> -> vector<64x128xf32>
    %c1 = arith.constant 1 : index
    %c0_23 = arith.constant 0 : index
    %64 = vector.load %arg5[%c1, %c0_23] : memref<3x256xf32, #tpu.memory_space<vmem>>, vector<1x128xf32>
    %65 = vector.broadcast %64 : vector<1x128xf32> to vector<64x128xf32>
    %66 = arith.addf %63, %65 : vector<64x128xf32>
    %67 = arith.truncf %66 : vector<64x128xf32> to vector<64x128xbf16>
    %c0_24 = arith.constant 0 : index
    %c0_25 = arith.constant 0 : index
    %68 = vector.load %arg4[%c0_24, %c0_25] : memref<128x128xbf16, #tpu.memory_space<vmem>>, vector<128x128xbf16>
    %cst_26 = arith.constant dense<0.000000e+00> : vector<64x128xf32>
    %69 = tpu.matmul %67, %68, %cst_26 {dimension_numbers = #tpu.dot_dimension_numbers<[1], [0], [0], [1], [0, 0, 1, 1], [], []>} : vector<64x128xbf16>, vector<128x128xbf16>, vector<64x128xf32> -> vector<64x128xf32>
    %c2 = arith.constant 2 : index
    %c0_27 = arith.constant 0 : index
    %70 = vector.load %arg5[%c2, %c0_27] : memref<3x256xf32, #tpu.memory_space<vmem>>, vector<1x128xf32>
    %71 = vector.broadcast %70 : vector<1x128xf32> to vector<64x128xf32>
    %72 = arith.addf %69, %71 : vector<64x128xf32>
    %cst_28 = arith.constant 5.000000e-01 : f32
    %73 = vector.broadcast %cst_28 : f32 to vector<64x128xf32>
    %74 = arith.mulf %73, %72 : vector<64x128xf32>
    %cst_29 = arith.constant 0.707106769 : f32
    %75 = vector.broadcast %cst_29 : f32 to vector<64x128xf32>
    %76 = arith.mulf %72, %75 : vector<64x128xf32>
    %cst_30 = arith.constant -4.000000e+00 : f32
    %cst_31 = arith.constant 4.000000e+00 : f32
    %77 = vector.broadcast %cst_30 : f32 to vector<64x128xf32>
    %78 = arith.maximumf %77, %76 : vector<64x128xf32>
    %79 = vector.broadcast %cst_31 : f32 to vector<64x128xf32>
    %80 = arith.minimumf %79, %78 : vector<64x128xf32>
    %81 = arith.mulf %80, %80 : vector<64x128xf32>
    %cst_32 = arith.constant 2.29050653E-4 : f32
    %82 = vector.broadcast %cst_32 : f32 to vector<64x128xf32>
    %83 = arith.mulf %82, %81 : vector<64x128xf32>
    %cst_33 = arith.constant 0.00340829091 : f32
    %84 = vector.broadcast %cst_33 : f32 to vector<64x128xf32>
    %85 = arith.addf %83, %84 : vector<64x128xf32>
    %86 = arith.mulf %85, %81 : vector<64x128xf32>
    %cst_34 = arith.constant 0.0509556942 : f32
    %87 = vector.broadcast %cst_34 : f32 to vector<64x128xf32>
    %88 = arith.addf %86, %87 : vector<64x128xf32>
    %89 = arith.mulf %88, %81 : vector<64x128xf32>
    %cst_35 = arith.constant 0.185208321 : f32
    %90 = vector.broadcast %cst_35 : f32 to vector<64x128xf32>
    %91 = arith.addf %89, %90 : vector<64x128xf32>
    %92 = arith.mulf %91, %81 : vector<64x128xf32>
    %cst_36 = arith.constant 1.12837911 : f32
    %93 = vector.broadcast %cst_36 : f32 to vector<64x128xf32>
    %94 = arith.addf %92, %93 : vector<64x128xf32>
    %cst_37 = arith.constant -1.17916031E-7 : f32
    %95 = vector.broadcast %cst_37 : f32 to vector<64x128xf32>
    %96 = arith.mulf %95, %81 : vector<64x128xf32>
    %cst_38 = arith.constant 2.35479656E-5 : f32
    %97 = vector.broadcast %cst_38 : f32 to vector<64x128xf32>
    %98 = arith.addf %96, %97 : vector<64x128xf32>
    %99 = arith.mulf %98, %81 : vector<64x128xf32>
    %cst_39 = arith.constant 0.00101796258 : f32
    %100 = vector.broadcast %cst_39 : f32 to vector<64x128xf32>
    %101 = arith.addf %99, %100 : vector<64x128xf32>
    %102 = arith.mulf %101, %81 : vector<64x128xf32>
    %cst_40 = arith.constant 0.0140704699 : f32
    %103 = vector.broadcast %cst_40 : f32 to vector<64x128xf32>
    %104 = arith.addf %102, %103 : vector<64x128xf32>
    %105 = arith.mulf %104, %81 : vector<64x128xf32>
    %cst_41 = arith.constant 0.110985048 : f32
    %106 = vector.broadcast %cst_41 : f32 to vector<64x128xf32>
    %107 = arith.addf %105, %106 : vector<64x128xf32>
    %108 = arith.mulf %107, %81 : vector<64x128xf32>
    %cst_42 = arith.constant 0.497469246 : f32
    %109 = vector.broadcast %cst_42 : f32 to vector<64x128xf32>
    %110 = arith.addf %108, %109 : vector<64x128xf32>
    %111 = arith.mulf %110, %81 : vector<64x128xf32>
    %cst_43 = arith.constant 1.000000e+00 : f32
    %112 = vector.broadcast %cst_43 : f32 to vector<64x128xf32>
    %113 = arith.addf %111, %112 : vector<64x128xf32>
    %114 = arith.mulf %80, %94 : vector<64x128xf32>
    %115 = tpu.reciprocal %113 {approx = true} : vector<64x128xf32> -> vector<64x128xf32>
    %116 = arith.mulf %114, %115 : vector<64x128xf32>
    %cst_44 = arith.constant 1.000000e+00 : f32
    %117 = vector.broadcast %cst_44 : f32 to vector<64x128xf32>
    %118 = arith.addf %117, %116 : vector<64x128xf32>
    %119 = arith.mulf %74, %118 : vector<64x128xf32>
    %120 = arith.addf %119, %7 : vector<64x128xf32>
    %c0_45 = arith.constant 0 : index
    %c0_46 = arith.constant 0 : index
    %c0_47 = arith.constant 0 : index
    %121 = vector.load %arg6[%c0_45, %c0_46, %c0_47] : memref<1x64x128xf32, #tpu.memory_space<vmem>>, vector<1x64x128xf32>
    %122 = vector.shape_cast %121 : vector<1x64x128xf32> to vector<64x128xf32>
    %123 = vector.shape_cast %120 : vector<64x128xf32> to vector<1x64x128xf32>
    tpu.vector_store %arg6[%c0_45, %c0_46, %c0_47], %123 {strides = array<i32>} : memref<1x64x128xf32, #tpu.memory_space<vmem>>, vector<1x64x128xf32>,
    return
  }
  func.func @transform_0(%arg0: i32) -> (i32, i32, i32) {
    %c0_i32 = arith.constant 0 : i32
    %c0_i32_0 = arith.constant 0 : i32
    %c0_i32_1 = arith.constant 0 : i32
    return %arg0, %c0_i32, %c0_i32_0 : i32, i32, i32
  }
  func.func @transform_1(%arg0: i32) -> (i32, i32) {
    %c0_i32 = arith.constant 0 : i32
    %c0_i32_0 = arith.constant 0 : i32
    %c0_i32_1 = arith.constant 0 : i32
    return %c0_i32, %c0_i32_0 : i32, i32
  }
  func.func @transform_2(%arg0: i32) -> (i32, i32) {
    %c0_i32 = arith.constant 0 : i32
    %c0_i32_0 = arith.constant 0 : i32
    %c0_i32_1 = arith.constant 0 : i32
    return %c0_i32, %c0_i32_0 : i32, i32
  }
  func.func @transform_3(%arg0: i32) -> (i32, i32) {
    %c0_i32 = arith.constant 0 : i32
    %c0_i32_0 = arith.constant 0 : i32
    %c0_i32_1 = arith.constant 0 : i32
    return %c0_i32, %c0_i32_0 : i32, i32
  }
  func.func @transform_4(%arg0: i32) -> (i32, i32) {
    %c0_i32 = arith.constant 0 : i32
    %c0_i32_0 = arith.constant 0 : i32
    %c0_i32_1 = arith.constant 0 : i32
    return %c0_i32, %c0_i32_0 : i32, i32
  }
  func.func @transform_5(%arg0: i32) -> (i32, i32, i32) {
    %c0_i32 = arith.constant 0 : i32
    %c0_i32_0 = arith.constant 0 : i32
    %c0_i32_1 = arith.constant 0 : i32
    return %arg0, %c0_i32, %c0_i32_0 : i32, i32, i32
  }
}

</mosaic_0001>

<bundles_post_ra>
// kernel: conv_encoder_block.1
= control target key start
LH: loop header
LB: loop body
LE: loop exit
PB: predicated region body
PF: predicated region fallthrough
CT: control target
= control target key end

     0   :  { %s2895_s18 = smov 0   ;;  %s3760_s0 = inlined_call_operand.vmem [shape: bf16[2,256,128], index: 0, kind: input, shape index: {}]   ;;  %s3761_s1 = inlined_call_operand.vmem [shape: bf16[128,256], index: 1, kind: input, shape index: {}]   ;;  %s3762_s2 = inlined_call_operand.vmem [shape: bf16[1152,128], index: 2, kind: input, shape index: {}]   ;;  %s3763_s3 = inlined_call_operand.vmem [shape: bf16[128,128], index: 3, kind: input, shape index: {}]   ;;  %s3764_s4 = inlined_call_operand.vmem [shape: f32[3,256], index: 4, kind: input, shape index: {}]   ;;  %s3765_s5 = inlined_call_operand.vmem [shape: f32[2,64,128], index: 5, kind: output, shape index: {}]  }
   0x1 LB: > { %s2272_s19 = sadd.s32 4294967295, %s2860_s18   ;;  %p2276_p0 = scmp.ge.s32.totalorder %s2860_s18, 1  ;;  %s2860_s18 = sphi %s2895_s18, %s15_s18  }
   0x2   : > { %p187_p1 = scmp.lt.s32.totalorder %s2860_s18, 3 }
   0x4   : > { %p188_p2 = pnand %p2276_p0, %p187_p1 }
   0x5   : > { %v2717_v0 = vld [vmem:[%s3761_s1 + $0x4] ss:$8 sps:$4 sm:$0xff] (!%p188_p2)   ;;  %p215_p3 = scmp.lt.s32.totalorder (!%p188_p2), %s2272_s19, 1  ;;  %v2719_v1 = vld [vmem:[%s3761_s1] ss:$8 sps:$4 sm:$0xff] (!%p188_p2)   ;;  %v2862_v2 = vmov (!%p188_p2), 0   ;;  %v276_v56 = vlaneseq (!%p188_p2) }
   0x6   : > { %191 = sbr.rel (%p188_p2) target bundleno = 919 (0x397), region = 40  ;;  %494 = vmatprep.mubr.bf16.mxu0 (!%p188_p2), %v2862_v2  ;;  %462 = vmatprep.subr.bf16.mxu0 (!%p188_p2), %v2717_v0  ;;  %v2720_v3 = vld [vmem:[%s3761_s1 + $0x14] ss:$8 sps:$4 sm:$0xff] (!%p188_p2)   ;;  %v2722_v4 = vld [vmem:[%s3761_s1 + $0x10] ss:$8 sps:$4 sm:$0xff] (!%p188_p2)   ;;  %v2757_v29 = vld [vmem:[%s3762_s2 + $0x40] sm:$0xff] (!%p188_p2)  }
   0x7   : > { %463 = vmatpush1.bf16.msra.mxu0 (!%p188_p2), %v2719_v1  ;;  %v2723_v5 = vld [vmem:[%s3761_s1 + $0x24] ss:$8 sps:$4 sm:$0xff] (!%p188_p2)   ;;  %v2725_v6 = vld [vmem:[%s3761_s1 + $0x20] ss:$8 sps:$4 sm:$0xff] (!%p188_p2)   ;;  %v2726_v7 = vld [vmem:[%s3761_s1 + $0x34] ss:$8 sps:$4 sm:$0xff] (!%p188_p2)   ;;  %2474 = vmatprep.subr.bf16.mxu1 (!%p188_p2), %v2757_v29 }
   0x8   : > { %464 = vmatprep.subr.bf16.mxu0 (!%p188_p2), %v2720_v3  ;;  %v2728_v8 = vld [vmem:[%s3761_s1 + $0x30] ss:$8 sps:$4 sm:$0xff] (!%p188_p2)   ;;  %v2729_v9 = vld [vmem:[%s3761_s1 + $0x44] ss:$8 sps:$4 sm:$0xff] (!%p188_p2)   ;;  %v2731_v10 = vld [vmem:[%s3761_s1 + $0x40] ss:$8 sps:$4 sm:$0xff] (!%p188_p2)  }
   0x9   : > { %v2732_v11 = vld [vmem:[%s3761_s1 + $0x54] ss:$8 sps:$4 sm:$0xff] (!%p188_p2)   ;;  %v2734_v12 = vld [vmem:[%s3761_s1 + $0x50] ss:$8 sps:$4 sm:$0xff] (!%p188_p2)   ;;  %v2735_v13 = vld [vmem:[%s3761_s1 + $0x64] ss:$8 sps:$4 sm:$0xff] (!%p188_p2)  }
   0xa   : > { %v2737_v14 = vld [vmem:[%s3761_s1 + $0x60] ss:$8 sps:$4 sm:$0xff] (!%p188_p2)   ;;  %v2738_v15 = vld [vmem:[%s3761_s1 + $0x74] ss:$8 sps:$4 sm:$0xff] (!%p188_p2)   ;;  %v2740_v16 = vld [vmem:[%s3761_s1 + $0x70] ss:$8 sps:$4 sm:$0xff] (!%p188_p2)  }
   0xb   : > { %465 = vmatpush1.bf16.msra.mxu0 (!%p188_p2), %v2722_v4  ;;  %v2758_v30 = vld [vmem:[%s3762_s2] sm:$0xff] (!%p188_p2)   ;;  %v2759_v32 = vld [vmem:[%s3762_s2 + $0x48] sm:$0xff] (!%p188_p2)   ;;  %v2761_v34 = vld [vmem:[%s3762_s2 + $0x50] sm:$0xff] (!%p188_p2)   ;;  %v3060_v57 = vshrl.u32 (!%p188_p2), %v276_v56, 7  ;;  %vm2864_vm13 = vmmov (!%p188_p2), 1  }
   0xc   : > { %466 = vmatprep.subr.bf16.mxu0 (!%p188_p2), %v2723_v5  ;;  %2475 = vmatpush3.bf16.msra.mxu1 (!%p188_p2), %v2758_v30  ;;  %v2760_v33 = vld [vmem:[%s3762_s2 + $0x8] sm:$0xff] (!%p188_p2)   ;;  %v2762_v35 = vld [vmem:[%s3762_s2 + $0x10] sm:$0xff] (!%p188_p2)   ;;  %v2763_v37 = vld [vmem:[%s3762_s2 + $0x58] sm:$0xff] (!%p188_p2)  }
   0xd   : > { %s3777_s19 = smov (!%p215_p3, %s2272_s19), 1  ;;  %2476 = vmatprep.subr.bf16.mxu1 %v2759_v32  ;;  %v2764_v38 = vld [vmem:[%s3762_s2 + $0x18] sm:$0xff]   ;;  %v2765_v39 = vld [vmem:[%s3762_s2 + $0x60] sm:$0xff]   ;;  %v2768_v42 = vld [vmem:[%s3762_s2 + $0x68] sm:$0xff]   ;;  %v278_v59 = vsub.s32 0, %v3060_v57  ;;  %vm760_vm0 = vcmp.lt.s32.totalorder %v3060_v57, 1 }
   0xe   : > { %s2464_s30 = sshll.u32 %s3777_s19, 7  ;;  %v2766_v40 = vld [vmem:[%s3762_s2 + $0x20] sm:$0xff]   ;;  %v2769_v43 = vld [vmem:[%s3762_s2 + $0x28] sm:$0xff]   ;;  %v2770_v45 = vld [vmem:[%s3762_s2 + $0x70] sm:$0xff]   ;;  %s2465_s17 = sshll.u32 %s3777_s19, 6 }
   0xf   : > { %s2931_s12 = scalar_lea.vmem %s3760_s0, %s2464_s30  ;;  %467 = vmatpush1.bf16.msra.mxu0 %v2725_v6  ;;  %v2767_v44 = vld [vmem:[%s3762_s2 + $0x200] sm:$0xff]   ;;  %v2771_v46 = vld [vmem:[%s3762_s2 + $0x30] sm:$0xff]   ;;  %v2772_v48 = vld [vmem:[%s3762_s2 + $0x78] sm:$0xff]   ;;  %s3701_s21 = scalar_lea.vmem %s3765_s5, %s2465_s17 }
  0x10   : > { %468 = vmatprep.subr.bf16.mxu0 %v2726_v7  ;;  %v2741_v17 = vld [vmem:[%s2931_s12] sm:$0xff]   ;;  %v2742_v18 = vld [vmem:[%s2931_s12 + $0x8] sm:$0xff]   ;;  %v2743_v19 = vld [vmem:[%s2931_s12 + $0x10] sm:$0xff]   ;;  %2477 = vmatpush3.bf16.msra.mxu1 %v2760_v33 }
  0x11   : > { %v2744_v20 = vld [vmem:[%s2931_s12 + $0x18] sm:$0xff]   ;;  %v2745_v21 = vld [vmem:[%s2931_s12 + $0x20] sm:$0xff]   ;;  %v2746_v22 = vld [vmem:[%s2931_s12 + $0x28] sm:$0xff]   ;;  %2478 = vmatprep.subr.bf16.mxu1 %v2761_v34 }
  0x12   : > { %v2747_v23 = vld [vmem:[%s2931_s12 + $0x30] sm:$0xff]   ;;  %v2748_v24 = vld [vmem:[%s2931_s12 + $0x38] sm:$0xff]   ;;  %v2749_v25 = vld [vmem:[%s2931_s12 + $0x40] sm:$0xff]  }
  0x13   : > { %469 = vmatpush1.bf16.msra.mxu0 %v2728_v8  ;;  %v2750_v26 = vld [vmem:[%s2931_s12 + $0x48] sm:$0xff]   ;;  %v2751_v27 = vld [vmem:[%s2931_s12 + $0x50] sm:$0xff]   ;;  %v2752_v28 = vld [vmem:[%s2931_s12 + $0x58] sm:$0xff]  }
  0x14   : > { %470 = vmatprep.subr.bf16.mxu0 %v2729_v9  ;;  %v2753_v31 = vld [vmem:[%s2931_s12 + $0x60] sm:$0xff]   ;;  %v2754_v36 = vld [vmem:[%s2931_s12 + $0x68] sm:$0xff]   ;;  %2479 = vmatpush3.bf16.msra.mxu1 %v2762_v35  ;;  %v2755_v41 = vld [vmem:[%s2931_s12 + $0x70] sm:$0xff]  }
  0x15   : > { %2480 = vmatprep.subr.bf16.mxu1 %v2763_v37  ;;  %v2756_v47 = vld [vmem:[%s2931_s12 + $0x78] sm:$0xff]   ;;  %v2774_v50 = vld [vmem:[%s3762_s2 + $0xc0] sm:$0xff]   ;;  %v2776_v51 = vld [vmem:[%s3762_s2 + $0x208] sm:$0xff]  }
  0x16   : > { %v2773_v49 = vld [vmem:[%s3762_s2 + $0x38] sm:$0xff]   ;;  %v2785_v52 = vld [vmem:[%s3762_s2 + $0x210] sm:$0xff]   ;;  %v2803_v54 = vld [vmem:[%s3762_s2 + $0x220] sm:$0xff]  }
  0x17   : > { %471 = vmatpush1.bf16.msra.mxu0 %v2731_v10  ;;  %v2794_v53 = vld [vmem:[%s3762_s2 + $0x218] sm:$0xff]   ;;  %v2812_v55 = vld [vmem:[%s3762_s2 + $0x228] sm:$0xff]   ;;  %v2821_v58 = vld [vmem:[%s3762_s2 + $0x230] sm:$0xff]  }
  0x18   : > { %472 = vmatprep.subr.bf16.mxu0 %v2732_v11  ;;  %2481 = vmatpush3.bf16.msra.mxu1 %v2764_v38  ;;  %v274_v60 = vld [vmem:[%s3764_s4] ss:$4 sm:$0x3]  ;;  %v2825_v61 = vld [vmem:[%s3762_s2 + $0x238] sm:$0xff]   ;;  %v2777_v37 = vld [vmem:[%s3762_s2 + $0xc8] sm:$0xff]  }
  0x19   : > { %2482 = vmatprep.subr.bf16.mxu1 %v2765_v39  ;;  %v3072_v62 = vrot.slane %v274_v60, %v278_v59  ;;  %v2782_v59 = vld [vmem:[%s3762_s2 + $0x98] sm:$0xff]  }
  0x1b   : > { %473 = vmatpush1.bf16.msra.mxu0 %v2734_v12 }
  0x1c   : > { %474 = vmatprep.subr.bf16.mxu0 %v2735_v13  ;;  %2483 = vmatpush3.bf16.msra.mxu1 %v2766_v40 }
  0x1d   : > { %2484 = vmatprep.subr.bf16.mxu1 %v2768_v42  ;;  %v2778_v42 = vld [vmem:[%s3762_s2 + $0x88] sm:$0xff]  }
  0x1f   : > { %475 = vmatpush1.bf16.msra.mxu0 %v2737_v14 }
  0x20   : > { %476 = vmatprep.subr.bf16.mxu0 %v2738_v15  ;;  %2485 = vmatpush3.bf16.msra.mxu1 %v2769_v43 }
  0x21   : > { %2486 = vmatprep.subr.bf16.mxu1 %v2770_v45 }
  0x23   : > { %477 = vmatpush1.bf16.msra.mxu0 %v2740_v16 }
  0x24   : > { %2658 = vmatprep.subr.bf16.mxu0 %v2767_v44  ;;  %2487 = vmatpush3.bf16.msra.mxu1 %v2771_v46 }
  0x25   : > { %2488 = vmatprep.subr.bf16.mxu1 %v2772_v48 }
  0x26   : > { %495 = vmatmul.mubr.bf16.vlgmr.msra.gmra.mrb[0].mxu0 %v2741_v17 }
  0x27   : > { %504 = vmatprep.mubr.bf16.mxu0 %v2862_v2  ;;  %2659 = vmatpush3.bf16.msra.mxu0 %v2767_v44  ;;  %v2779_v44 = vld [vmem:[%s3762_s2 + $0xd0] sm:$0xff]  }
  0x28   : > { %2489 = vmatpush3.bf16.msra.mxu1 %v2773_v49  ;;  %2660 = vmatprep.subr.bf16.mxu0 %v2776_v51 }
  0x29   : > { %2514 = vmatprep.subr.bf16.mxu1 %v2774_v50 }
  0x2b   : > { %2661 = vmatpush3.bf16.msra.mxu0 %v2776_v51  ;;  %v2780_v51 = vld [vmem:[%s3762_s2 + $0x90] sm:$0xff]  }
  0x2c   : > { %2662 = vmatprep.subr.bf16.mxu0 %v2785_v52 }
  0x2e   : > { %505 = vmatmul.mubr.bf16.gmra.mrb[4].mxu0 %v2742_v18 }
  0x2f   : > { %514 = vmatprep.mubr.bf16.mxu0 %v2862_v2  ;;  %2663 = vmatpush3.bf16.msra.mxu0 %v2785_v52  ;;  %v2781_v52 = vld [vmem:[%s3762_s2 + $0xd8] sm:$0xff]  }
  0x30   : > { %2664 = vmatprep.subr.bf16.mxu0 %v2794_v53 }
  0x33   : > { %2665 = vmatpush3.bf16.msra.mxu0 %v2794_v53 }
  0x34   : > { %2666 = vmatprep.subr.bf16.mxu0 %v2803_v54 }
  0x36   : > { %515 = vmatmul.mubr.bf16.gmra.mrb[8].mxu0 %v2743_v19 }
  0x37   : > { %524 = vmatprep.mubr.bf16.mxu0 %v2862_v2  ;;  %2667 = vmatpush3.bf16.msra.mxu0 %v2803_v54 }
  0x38   : > { %2668 = vmatprep.subr.bf16.mxu0 %v2812_v55 }
  0x3b   : > { %2669 = vmatpush3.bf16.msra.mxu0 %v2812_v55 }
  0x3c   : > { %2670 = vmatprep.subr.bf16.mxu0 %v2821_v58 }
  0x3e   : > { %525 = vmatmul.mubr.bf16.gmra.mrb[12].mxu0 %v2744_v20 }
  0x3f   : > { %534 = vmatprep.mubr.bf16.mxu0 %v2862_v2  ;;  %2671 = vmatpush3.bf16.msra.mxu0 %v2821_v58 }
  0x40   : > { %2672 = vmatprep.subr.bf16.mxu0 %v2825_v61 }
  0x43   : > { %2673 = vmatpush3.bf16.msra.mxu0 %v2825_v61  ;;  %v2783_v61 = vld [vmem:[%s3762_s2 + $0xe0] sm:$0xff]  }
  0x46   : > { %535 = vmatmul.mubr.bf16.gmra.mrb[16].mxu0 %v2745_v21 }
  0x47   : > { %542 = vmatprep.mubr.bf16.mxu0 %v2862_v2 }
  0x4e   : > { %543 = vmatmul.mubr.bf16.gmra.mrb[20].mxu0 %v2746_v22 }
  0x4f   : > { %550 = vmatprep.mubr.bf16.mxu0 %v2862_v2 }
  0x56   : > { %551 = vmatmul.mubr.bf16.gmra.mrb[24].mxu0 %v2747_v23 }
  0x57   : > { %558 = vmatprep.mubr.bf16.mxu0 %v2862_v2 }
  0x5e   : > { %559 = vmatmul.mubr.bf16.gmra.mrb[28].mxu0 %v2748_v24 }
  0x5f   : > { %566 = vmatprep.mubr.bf16.mxu0 %v2862_v2 }
  0x66   : > { %567 = vmatmul.mubr.bf16.gmra.mrb[32].mxu0 %v2749_v25 }
  0x67   : > { %574 = vmatprep.mubr.bf16.mxu0 %v2862_v2 }
  0x6e   : > { %575 = vmatmul.mubr.bf16.gmra.mrb[36].mxu0 %v2750_v26 }
  0x6f   : > { %582 = vmatprep.mubr.bf16.mxu0 %v2862_v2 }
  0x76   : > { %583 = vmatmul.mubr.bf16.gmra.mrb[40].mxu0 %v2751_v27 }
  0x77   : > { %590 = vmatprep.mubr.bf16.mxu0 %v2862_v2 }
  0x7e   : > { %591 = vmatmul.mubr.bf16.gmra.mrb[44].mxu0 %v2752_v28 }
  0x7f   : > { %598 = vmatprep.mubr.bf16.mxu0 %v2862_v2 }
  0x86   : > { %599 = vmatmul.mubr.bf16.gmra.mrb[48].mxu0 %v2753_v31 }
  0x87   : > { %606 = vmatprep.mubr.bf16.mxu0 %v2862_v2 }
  0x8e   : > { %607 = vmatmul.mubr.bf16.gmra.mrb[52].mxu0 %v2754_v36  ;;  %v2775_v36 = vld [vmem:[%s3762_s2 + $0x80] sm:$0xff]  }
  0x8f   : > { %614 = vmatprep.mubr.bf16.mxu0 %v2862_v2 }
  0x96   : > { %615 = vmatmul.mubr.bf16.gmra.mrb[56].mxu0 %v2755_v41 }
  0x97   : > { %622 = vmatprep.mubr.bf16.mxu0 %v2862_v2 }
  0x9e   : > { %623 = vmatmul.mubr.bf16.gmra.mrb[60].mxu0 %v2756_v47 }
  0xf9   : > { %v496_v63 = vpop.f32.mrb[0].mxu0 }
  0xfa   : > { %v3074_v0 = vpop.f32.mrb[1].mxu0  ;;  %v497_v2 = vadd.f32 %v496_v63, %v3072_v62 }
  0xfb   : > { %v500_v1 = vpop.f32.mrb[2].mxu0 }
  0xfc   : > { %v501_v3 = vadd.f32 %v500_v1, %v3072_v62  ;;  %v3078_v4 = vpop.f32.mrb[3].mxu0 }
  0xfe   : > { %v881_v5 = vpack.c.bf16 %v501_v3, %v497_v2 }
 0x101   : > { %v506_v6 = vpop.f32.mrb[4].mxu0 }
 0x102   : > { %v3080_v7 = vpop.f32.mrb[5].mxu0  ;;  %v507_v9 = vadd.f32 %v506_v6, %v3072_v62 }
 0x103   : > { %v510_v8 = vpop.f32.mrb[6].mxu0 }
 0x104   : > { %v511_v10 = vadd.f32 %v510_v8, %v3072_v62  ;;  %v3084_v11 = vpop.f32.mrb[7].mxu0  ;;  %v2784_v8 = vld [vmem:[%s3762_s2 + $0xa0] sm:$0xff]  }
 0x106   : > { %v890_v12 = vpack.c.bf16 %v511_v10, %v507_v9  ;;  %v2786_v9 = vld [vmem:[%s3762_s2 + $0xe8] sm:$0xff]  }
 0x109   : > { %v516_v13 = vpop.f32.mrb[8].mxu0 }
 0x10a   : > { %v3086_v14 = vpop.f32.mrb[9].mxu0  ;;  %v3089_v16 = vadd.f32 %v516_v13, %v3072_v62 }
 0x10b   : > { %v520_v15 = vpop.f32.mrb[10].mxu0 }
 0x10c   : > { %v3092_v17 = vadd.f32 %v520_v15, %v3072_v62  ;;  %v3094_v18 = vpop.f32.mrb[11].mxu0 }
 0x10e   : > { %v899_v19 = vpack.c.bf16 %v3092_v17, %v3089_v16  ;;  %v633_v16 = vadd.s32 8, %v3060_v57 }
 0x111   : > { %v526_v20 = vpop.f32.mrb[12].mxu0 }
 0x112   : > { %v3098_v21 = vpop.f32.mrb[13].mxu0  ;;  %v3101_v23 = vadd.f32 %v526_v20, %v3072_v62 }
 0x113   : > { %v530_v22 = vpop.f32.mrb[14].mxu0 }
 0x114   : > { %v3104_v24 = vadd.f32 %v530_v22, %v3072_v62  ;;  %v3106_v25 = vpop.f32.mrb[15].mxu0  ;;  %v2787_v22 = vld [vmem:[%s3762_s2 + $0xa8] sm:$0xff]  }
 0x116   : > { %v908_v26 = vpack.c.bf16 %v3104_v24, %v3101_v23  ;;  %v634_v24 = vadd.s32 16, %v3060_v57  ;;  %v2830_v23 = vld [vmem:[%s3763_s3 + $0x8] sm:$0xff]  }
 0x119   : > { %v536_v27 = vpop.f32.mrb[16].mxu0 }
 0x11a   : > { %v3111_v28 = vadd.f32 %v536_v27, %v3072_v62  ;;  %v538_v29 = vpop.f32.mrb[17].mxu0 }
 0x11b   : > { %v539_v30 = vpop.f32.mrb[18].mxu0  ;;  %v2788_v29 = vld [vmem:[%s3762_s2 + $0xf0] sm:$0xff]  }
 0x11c   : > { %v540_v31 = vadd.f32 %v539_v30, %v3072_v62  ;;  %v541_v32 = vpop.f32.mrb[19].mxu0  ;;  %v752_v33 = vrot.slane %v3111_v28, 7 }
 0x11e   : > { %v753_v34 = vrot.slane %v540_v31, 7  ;;  %v882_v35 = vpack.c.bf16 %v540_v31, %v3111_v28  ;;  %v2791_v28 = vld [vmem:[%s3762_s2 + $0xb8] sm:$0xff]  }
 0x120   : > { %v3127_v38 = vsel %vm760_vm0, %v752_v33, %v753_v34  ;;  %1530 = vmatprep.mubr.bf16.mxu1 %v882_v35  ;;  %v2789_v35 = vld [vmem:[%s3762_s2 + $0xb0] sm:$0xff]  }
 0x121   : > { %v544_v39 = vpop.f32.mrb[20].mxu0  ;;  %1531 = vmatmul.mubr.bf16.vlgmr.msra.gmra.mrb[0].mxu1 %v881_v5 }
 0x122   : > { %v545_v40 = vadd.f32 %v544_v39, %v3072_v62  ;;  %2515 = vmatpush3.bf16.msra.mxu1 %v2775_v36  ;;  %v546_v41 = vpop.f32.mrb[21].mxu0  ;;  %v2790_v36 = vld [vmem:[%s3762_s2 + $0xf8] sm:$0xff]   ;;  %v651_v39 = vand.u32 7, %v633_v16 }
 0x123   : > { %v547_v43 = vpop.f32.mrb[22].mxu0  ;;  %2516 = vmatprep.subr.bf16.mxu1 %v2777_v37  ;;  %v644_v37 = vand.u32 7, %v3060_v57 }
 0x124   : > { %v754_v45 = vrot.slane %v545_v40, 7  ;;  %v548_v46 = vadd.f32 %v547_v43, %v3072_v62  ;;  %v549_v47 = vpop.f32.mrb[23].mxu0  ;;  %vm3220_vm1 = vcmp.ne.s32.totalorder %v651_v39, 0 }
 0x125   : > { %vm3224_vm2 = vcmp.ne.s32.totalorder %v644_v37, 0  ;;  %vm2427_vm14 = vmpackc.low %vm3220_vm1, %vm2864_vm13 }
 0x126   : > { %v3139_v48 = vsel %vm760_vm0, %v753_v34, %v754_v45  ;;  %v755_v49 = vrot.slane %v548_v46, 7  ;;  %v891_v50 = vpack.c.bf16 %v548_v46, %v545_v40  ;;  %2517 = vmatpush3.bf16.msra.mxu1 %v2778_v42  ;;  %vm2388_vm3 = vmpackc.low %vm3220_vm1, %vm3224_vm2 }
 0x127   : > { %2518 = vmatprep.subr.bf16.mxu1 %v2779_v44 }
 0x128   : > { %v3149_v53 = vsel %vm760_vm0, %v754_v45, %v755_v49  ;;  %1538 = vmatprep.mubr.bf16.mxu1 %v891_v50 }
 0x129   : > { %v552_v54 = vpop.f32.mrb[24].mxu0  ;;  %1539 = vmatmul.mubr.bf16.gmra.mrb[4].mxu1 %v890_v12  ;;  %v2394_v55 = vpack.c.bf16 %v3149_v53, %v3139_v48  ;;  %v638_v48 = vadd.s32 48, %v3060_v57  ;;  %v639_v53 = vadd.s32 56, %v3060_v57 }
 0x12a   : > { %v553_v56 = vadd.f32 %v552_v54, %v3072_v62  ;;  %2519 = vmatpush3.bf16.msra.mxu1 %v2780_v51  ;;  %v554_v58 = vpop.f32.mrb[25].mxu0  ;;  %v2795_v54 = vld [vmem:[%s3762_s2 + $0x148] sm:$0xff]  }
 0x12b   : > { %v555_v60 = vpop.f32.mrb[26].mxu0  ;;  %2520 = vmatprep.subr.bf16.mxu1 %v2781_v52  ;;  %v2793_v52 = vld [vmem:[%s3762_s2 + $0x100] sm:$0xff]  }
 0x12c   : > { %v756_v63 = vrot.slane %v553_v56, 7  ;;  %v556_v1 = vadd.f32 %v555_v60, %v3072_v62  ;;  %v557_v2 = vpop.f32.mrb[27].mxu0 }
 0x12d   : > { %v2797_v2 = vld [vmem:[%s3762_s2 + $0x150] sm:$0xff]  }
 0x12e   : > { %v3163_v3 = vsel %vm760_vm0, %v755_v49, %v756_v63  ;;  %v757_v5 = vrot.slane %v556_v1, 7  ;;  %v900_v6 = vpack.c.bf16 %v556_v1, %v553_v56  ;;  %2521 = vmatpush3.bf16.msra.mxu1 %v2782_v59  ;;  %v658_v56 = vand.u32 7, %v634_v24 }
 0x12f   : > { %2522 = vmatprep.subr.bf16.mxu1 %v2783_v61 }
 0x130   : > { %v3173_v10 = vsel %vm760_vm0, %v756_v63, %v757_v5  ;;  %1546 = vmatprep.mubr.bf16.mxu1 %v900_v6  ;;  %v2796_v63 = vld [vmem:[%s3762_s2 + $0x108] sm:$0xff]   ;;  %vm2469_vm5 = vcmp.ne.s32.totalorder %v658_v56, 0  ;;  %v637_v6 = vadd.s32 40, %v3060_v57  ;;  %v2807_v56 = vld [vmem:[%s3762_s2 + $0x130] sm:$0xff]  }
 0x131   : > { %v560_v12 = vpop.f32.mrb[28].mxu0  ;;  %1547 = vmatmul.mubr.bf16.gmra.mrb[8].mxu1 %v899_v19  ;;  %v2399_v13 = vpack.c.bf16 %v3173_v10, %v3163_v3 }
 0x132   : > { %v561_v15 = vadd.f32 %v560_v12, %v3072_v62  ;;  %2523 = vmatpush3.bf16.msra.mxu1 %v2784_v8  ;;  %v562_v20 = vpop.f32.mrb[29].mxu0  ;;  %v679_v16 = vand.u32 7, %v637_v6 }
 0x133   : > { %v563_v27 = vpop.f32.mrb[30].mxu0  ;;  %2524 = vmatprep.subr.bf16.mxu1 %v2786_v9  ;;  %v2831_v20 = vld [vmem:[%s3763_s3 + $0x10] sm:$0xff]  }
 0x134   : > { %v758_v17 = vrot.slane %v561_v15, 7  ;;  %v564_v19 = vadd.f32 %v563_v27, %v3072_v62  ;;  %v565_v30 = vpop.f32.mrb[31].mxu0  ;;  %v2799_v27 = vld [vmem:[%s3762_s2 + $0x158] sm:$0xff]   ;;  %vm2470_vm7 = vcmp.ne.s32.totalorder %v679_v16, 0 }
 0x136   : > { %v3191_v31 = vsel %vm760_vm0, %v757_v5, %v758_v17  ;;  %v759_v32 = vrot.slane %v564_v19, 7  ;;  %v909_v34 = vpack.c.bf16 %v564_v19, %v561_v15  ;;  %2525 = vmatpush3.bf16.msra.mxu1 %v2787_v22  ;;  %v636_v5 = vadd.s32 32, %v3060_v57  ;;  %v2798_v22 = vld [vmem:[%s3762_s2 + $0x110] sm:$0xff]  }
 0x137   : > { %2526 = vmatprep.subr.bf16.mxu1 %v2788_v29 }
 0x138   : > { %v3202_v40 = vsel %vm760_vm0, %v758_v17, %v759_v32  ;;  %v768_v41 = vsel %vm760_vm0, %v759_v32, %v752_v33  ;;  %1554 = vmatprep.mubr.bf16.mxu1 %v909_v34  ;;  %v2792_v33 = vld [vmem:[%s3762_s2 + $0x140] sm:$0xff]   ;;  %v672_v29 = vand.u32 7, %v636_v5  ;;  %v2800_v32 = vld [vmem:[%s3762_s2 + $0x118] sm:$0xff]  }
 0x139   : > { %v2389_v42 = vpack.c.bf16 %v3127_v38, %v768_v41  ;;  %v568_v43 = vpop.f32.mrb[32].mxu0  ;;  %1555 = vmatmul.mubr.bf16.gmra.mrb[12].mxu1 %v908_v26  ;;  %v2404_v44 = vpack.c.bf16 %v3202_v40, %v3191_v31  ;;  %v635_v26 = vadd.s32 24, %v3060_v57  ;;  %v2810_v5 = vld [vmem:[%s3762_s2 + $0x1c0] sm:$0xff]  }
 0x13a   : > { %2527 = vmatpush3.bf16.msra.mxu1 %v2789_v35  ;;  %v570_v45 = vpop.f32.mrb[33].mxu0  ;;  %v3231_v47 = vadd.f32 %v568_v43, %v3072_v62  ;;  %v2801_v35 = vld [vmem:[%s3762_s2 + $0x160] sm:$0xff]   ;;  %vm2471_vm8 = vcmp.ne.s32.totalorder %v672_v29, 0  ;;  %v2804_v43 = vld [vmem:[%s3762_s2 + $0x168] sm:$0xff]  }
 0x13b   : > { %v571_v46 = vpop.f32.mrb[34].mxu0  ;;  %2528 = vmatprep.subr.bf16.mxu1 %v2790_v36  ;;  %v665_v58 = vand.u32 7, %v635_v26  ;;  %vm3304_vm9 = vmpackc.low %vm2470_vm7, %vm2471_vm8  ;;  %v686_v45 = vand.u32 7, %v638_v48  ;;  %v2805_v26 = vld [vmem:[%s3762_s2 + $0x128] sm:$0xff]   ;;  %v2829_v38 = vld [vmem:[%s3763_s3] sm:$0xff]  }
 0x13c   : > { %v3234_v49 = vadd.f32 %v571_v46, %v3072_v62  ;;  %v573_v50 = vpop.f32.mrb[35].mxu0  ;;  %v2813_v29 = vld [vmem:[%s3762_s2 + $0x1c8] sm:$0xff]   ;;  %v2833_v41 = vld [vmem:[%s3763_s3 + $0x20] sm:$0xff]  }
 0x13d   : > { %vm2468_vm4 = vcmp.ne.s32.totalorder %v665_v58, 0  ;;  %vm2473_vm11 = vcmp.ne.s32.totalorder %v686_v45, 0  ;;  %v2808_v58 = vld [vmem:[%s3762_s2 + $0x178] sm:$0xff]  }
 0x13e   : > { %v884_v51 = vpack.c.bf16 %v3234_v49, %v3231_v47  ;;  %2529 = vmatpush3.bf16.msra.mxu1 %v2791_v28  ;;  %vm3271_vm6 = vmpackc.low %vm2468_vm4, %vm2469_vm5  ;;  %v693_v28 = vand.u32 7, %v639_v53 }
 0x13f   : > { %2554 = vmatprep.subr.bf16.mxu1 %v2792_v33 }
 0x140   : > { %1595 = vmatprep.mubr.bf16.mxu1 %v884_v51  ;;  %v2806_v51 = vld [vmem:[%s3762_s2 + $0x170] sm:$0xff]   ;;  %vm2472_vm10 = vcmp.ne.s32.totalorder %v693_v28, 0 }
 0x141   : > { %v576_v59 = vpop.f32.mrb[36].mxu0  ;;  %2390 = vmatmul.mubr.msk.bf16.vlgmr.msra.gmra.mrb[16].mxu1 %vm2388_vm3, %v2389_v42  ;;  %v2802_v42 = vld [vmem:[%s3762_s2 + $0x120] sm:$0xff]   ;;  %vm3332_vm12 = vmpackc.low %vm2472_vm10, %vm2473_vm11  ;;  %v2816_v28 = vld [vmem:[%s3762_s2 + $0x190] sm:$0xff]  }
 0x142   : > { %v3254_v60 = vadd.f32 %v576_v59, %v3072_v62  ;;  %2555 = vmatpush3.bf16.msra.mxu1 %v2793_v52  ;;  %v578_v61 = vpop.f32.mrb[37].mxu0 }
 0x143   : > { %v579_v1 = vpop.f32.mrb[38].mxu0  ;;  %2556 = vmatprep.subr.bf16.mxu1 %v2795_v54  ;;  %v2836_v54 = vld [vmem:[%s3763_s3 + $0x38] sm:$0xff]  }
 0x144   : > { %v894_v8 = vpack.c.bf16 %v3254_v60, %v3234_v49  ;;  %v3267_v9 = vadd.f32 %v579_v1, %v3072_v62  ;;  %v581_v12 = vpop.f32.mrb[39].mxu0  ;;  %v2809_v1 = vld [vmem:[%s3762_s2 + $0x138] sm:$0xff]  }
 0x146   : > { %v893_v15 = vpack.c.bf16 %v3267_v9, %v3254_v60  ;;  %2557 = vmatpush3.bf16.msra.mxu1 %v2796_v63 }
 0x147   : > { %2558 = vmatprep.subr.bf16.mxu1 %v2797_v2 }
 0x148   : > { %1603 = vmatprep.mubr.bf16.mxu1 %v893_v15  ;;  %v2811_v15 = vld [vmem:[%s3762_s2 + $0x180] sm:$0xff]  }
 0x149   : > { %v584_v17 = vpop.f32.mrb[40].mxu0  ;;  %2395 = vmatmul.mubr.msk.bf16.gmra.mrb[20].mxu1 %vm3271_vm6, %v2394_v55 }
 0x14a   : > { %v3287_v19 = vadd.f32 %v584_v17, %v3072_v62  ;;  %2559 = vmatpush3.bf16.msra.mxu1 %v2798_v22  ;;  %v586_v30 = vpop.f32.mrb[41].mxu0  ;;  %v2863_v22 = vmov 0.0  }
 0x14b   : > { %v587_v34 = vpop.f32.mrb[42].mxu0  ;;  %2560 = vmatprep.subr.bf16.mxu1 %v2799_v27  ;;  %v885_v27 = vpack.c.bf16 %v3231_v47, %v2863_v22  ;;  %v2814_v47 = vld [vmem:[%s3762_s2 + $0x188] sm:$0xff]  }
 0x14c   : > { %v903_v55 = vpack.c.bf16 %v3287_v19, %v3267_v9  ;;  %v3300_v36 = vadd.f32 %v587_v34, %v3072_v62  ;;  %v589_v37 = vpop.f32.mrb[43].mxu0 }
 0x14e   : > { %v902_v39 = vpack.c.bf16 %v3300_v36, %v3287_v19  ;;  %2561 = vmatpush3.bf16.msra.mxu1 %v2800_v32 }
 0x14f   : > { %2562 = vmatprep.subr.bf16.mxu1 %v2801_v35  ;;  %v2815_v35 = vld [vmem:[%s3762_s2 + $0x1d0] sm:$0xff]  }
 0x150   : > { %1611 = vmatprep.mubr.bf16.mxu1 %v902_v39 }
 0x151   : > { %v592_v46 = vpop.f32.mrb[44].mxu0  ;;  %2400 = vmatmul.mubr.msk.bf16.gmra.mrb[24].mxu1 %vm3304_vm9, %v2399_v13 }
 0x152   : > { %v3320_v33 = vadd.f32 %v592_v46, %v3072_v62  ;;  %2563 = vmatpush3.bf16.msra.mxu1 %v2802_v42  ;;  %v594_v24 = vpop.f32.mrb[45].mxu0  ;;  %v2817_v46 = vld [vmem:[%s3762_s2 + $0x1d8] sm:$0xff]  }
 0x153   : > { %v595_v50 = vpop.f32.mrb[46].mxu0  ;;  %2564 = vmatprep.subr.bf16.mxu1 %v2804_v43 }
 0x154   : > { %v912_v3 = vpack.c.bf16 %v3320_v33, %v3300_v36  ;;  %v596_v10 = vadd.f32 %v595_v50, %v3072_v62  ;;  %v597_v13 = vpop.f32.mrb[47].mxu0  ;;  %v2832_v36 = vld [vmem:[%s3763_s3 + $0x18] sm:$0xff]  }
 0x156   : > { %v911_v52 = vpack.c.bf16 %v596_v10, %v3320_v33  ;;  %2565 = vmatpush3.bf16.msra.mxu1 %v2805_v26  ;;  %v2834_v33 = vld [vmem:[%s3763_s3 + $0x28] sm:$0xff]  }
 0x157   : > { %2566 = vmatprep.subr.bf16.mxu1 %v2806_v51 }
 0x158   : > { %1619 = vmatprep.mubr.bf16.mxu1 %v911_v52  ;;  %v2818_v52 = vld [vmem:[%s3762_s2 + $0x198] sm:$0xff]  }
 0x159   : > { %v600_v59 = vpop.f32.mrb[48].mxu0  ;;  %2405 = vmatmul.mubr.msk.bf16.gmra.mrb[28].mxu1 %vm3332_vm12, %v2404_v44 }
 0x15a   : > { %v3348_v61 = vadd.f32 %v600_v59, %v3072_v62  ;;  %2567 = vmatpush3.bf16.msra.mxu1 %v2807_v56  ;;  %v602_v63 = vpop.f32.mrb[49].mxu0 }
 0x15b   : > { %v603_v2 = vpop.f32.mrb[50].mxu0  ;;  %2568 = vmatprep.subr.bf16.mxu1 %v2808_v58  ;;  %v2819_v58 = vld [vmem:[%s3762_s2 + $0x1e0] sm:$0xff]  }
 0x15c   : > { %v3357_v31 = vadd.f32 %v603_v2, %v3072_v62  ;;  %v605_v40 = vpop.f32.mrb[51].mxu0  ;;  %v817_v44 = vrot.slane %v3348_v61, 7  ;;  %v2820_v2 = vld [vmem:[%s3762_s2 + $0x1a0] sm:$0xff]  }
 0x15d   : > { %v2822_v40 = vld [vmem:[%s3762_s2 + $0x1e8] sm:$0xff]  }
 0x15e   : > { %v818_v6 = vrot.slane %v3357_v31, 7  ;;  %2569 = vmatpush3.bf16.msra.mxu1 %v2809_v1  ;;  %v886_v12 = vpack.c.bf16 %v3357_v31, %v3348_v61 }
 0x15f   : > { %2594 = vmatprep.subr.bf16.mxu1 %v2810_v5 }
 0x160   : > { %1660 = vmatprep.mubr.bf16.mxu1 %v886_v12  ;;  %v3375_v16 = vsel %vm760_vm0, %v817_v44, %v818_v6 }
 0x161   : > { %v608_v17 = vpop.f32.mrb[52].mxu0  ;;  %1661 = vmatmul.mubr.bf16.vlgmr.msra.gmra.mrb[32].mxu1 %v885_v27 }
 0x162   : > { %v3378_v30 = vadd.f32 %v608_v17, %v3072_v62  ;;  %2595 = vmatpush3.bf16.msra.mxu1 %v2811_v15  ;;  %v610_v32 = vpop.f32.mrb[53].mxu0 }
 0x163   : > { %v611_v34 = vpop.f32.mrb[54].mxu0  ;;  %2596 = vmatprep.subr.bf16.mxu1 %v2813_v29  ;;  %v2823_v32 = vld [vmem:[%s3762_s2 + $0x1a8] sm:$0xff]  }
 0x164   : > { %v819_v48 = vrot.slane %v3378_v30, 7  ;;  %v3388_v53 = vadd.f32 %v611_v34, %v3072_v62  ;;  %v613_v37 = vpop.f32.mrb[55].mxu0  ;;  %v897_v39 = vpack.c.bf16 %v3378_v30, %v3357_v31  ;;  %v2824_v34 = vld [vmem:[%s3762_s2 + $0x1f0] sm:$0xff]  }
 0x165   : > { %v2826_v37 = vld [vmem:[%s3762_s2 + $0x1b0] sm:$0xff]  }
 0x166   : > { %v3394_v42 = vsel %vm760_vm0, %v818_v6, %v819_v48  ;;  %v820_v43 = vrot.slane %v3388_v53, 7  ;;  %2597 = vmatpush3.bf16.msra.mxu1 %v2814_v47  ;;  %v895_v45 = vpack.c.bf16 %v3388_v53, %v3378_v30 }
 0x167   : > { %2598 = vmatprep.subr.bf16.mxu1 %v2815_v35  ;;  %v2433_v24 = vpack.c.bf16 %v3394_v42, %v3375_v16 }
 0x168   : > { %1668 = vmatprep.mubr.bf16.mxu1 %v895_v45  ;;  %v3409_v26 = vsel %vm760_vm0, %v819_v48, %v820_v43  ;;  %v2827_v45 = vld [vmem:[%s3762_s2 + $0x1f8] sm:$0xff]  }
 0x169   : > { %v616_v50 = vpop.f32.mrb[56].mxu0  ;;  %1669 = vmatmul.mubr.bf16.gmra.mrb[36].mxu1 %v894_v8  ;;  %v2414_v51 = vpack.c.bf16 %v3409_v26, %v3394_v42 }
 0x16a   : > { %v3417_v10 = vadd.f32 %v616_v50, %v3072_v62  ;;  %2599 = vmatpush3.bf16.msra.mxu1 %v2816_v28  ;;  %v618_v13 = vpop.f32.mrb[57].mxu0  ;;  %v888_v50 = vpack.c.bf16 %v3348_v61, %v2863_v22 }
 0x16b   : > { %v619_v56 = vpop.f32.mrb[58].mxu0  ;;  %2600 = vmatprep.subr.bf16.mxu1 %v2817_v46 }
 0x16c   : > { %v821_v49 = vrot.slane %v3417_v10, 7  ;;  %v620_v60 = vadd.f32 %v619_v56, %v3072_v62  ;;  %v621_v8 = vpop.f32.mrb[59].mxu0  ;;  %v906_v59 = vpack.c.bf16 %v3417_v10, %v3388_v53 }
 0x16e   : > { %v822_v63 = vrot.slane %v620_v60, 7  ;;  %2601 = vmatpush3.bf16.msra.mxu1 %v2818_v52  ;;  %v904_v1 = vpack.c.bf16 %v620_v60, %v3417_v10  ;;  %v828_v5 = vsel %vm760_vm0, %v820_v43, %v821_v49 }
 0x16f   : > { %2602 = vmatprep.subr.bf16.mxu1 %v2819_v58  ;;  %v2438_v6 = vpack.c.bf16 %v828_v5, %v3409_v26 }
 0x170   : > { %1676 = vmatprep.mubr.bf16.mxu1 %v904_v1  ;;  %v827_v12 = vsel %vm760_vm0, %v821_v49, %v822_v63 }
 0x171   : > { %v624_v15 = vpop.f32.mrb[60].mxu0  ;;  %1677 = vmatmul.mubr.bf16.gmra.mrb[40].mxu1 %v903_v55  ;;  %v2419_v27 = vpack.c.bf16 %v827_v12, %v828_v5 }
 0x172   : > { %v625_v29 = vadd.f32 %v624_v15, %v3072_v62  ;;  %2603 = vmatpush3.bf16.msra.mxu1 %v2820_v2  ;;  %v626_v17 = vpop.f32.mrb[61].mxu0 }
 0x173   : > { %v627_v47 = vpop.f32.mrb[62].mxu0  ;;  %2604 = vmatprep.subr.bf16.mxu1 %v2822_v40 }
 0x174   : > { %v823_v35 = vrot.slane %v625_v29, 7  ;;  %v628_v48 = vadd.f32 %v627_v47, %v3072_v62  ;;  %v629_v9 = vpop.f32.mrb[63].mxu0  ;;  %v915_v19 = vpack.c.bf16 %v625_v29, %v620_v60 }
 0x176   : > { %v824_v55 = vrot.slane %v628_v48, 7  ;;  %v913_v53 = vpack.c.bf16 %v628_v48, %v625_v29  ;;  %2605 = vmatpush3.bf16.msra.mxu1 %v2823_v32  ;;  %v826_v43 = vsel %vm760_vm0, %v822_v63, %v823_v35 }
 0x177   : > { %2606 = vmatprep.subr.bf16.mxu1 %v2824_v34  ;;  %v2443_v28 = vpack.c.bf16 %v826_v43, %v827_v12 }
 0x178   : > { %v825_v62 = vsel %vm760_vm0, %v823_v35, %v824_v55  ;;  %v832_v46 = vsel %vm760_vm0, %v824_v55, %v817_v44  ;;  %1684 = vmatprep.mubr.bf16.mxu1 %v913_v53  ;;  %v2828_v44 = vld [vmem:[%s3762_s2 + $0x1b8] sm:$0xff]  }
 0x179   : > { %v2409_v10 = vpack.c.bf16 %v3375_v16, %v832_v46  ;;  %1685 = vmatmul.mubr.bf16.gmra.mrb[44].mxu1 %v912_v3  ;;  %v2428_v13 = vpack.c.bf16 %v832_v46, %v2863_v22  ;;  %v2424_v52 = vpack.c.bf16 %v825_v62, %v826_v43  ;;  %v2835_v3 = vld [vmem:[%s3763_s3 + $0x30] sm:$0xff]  }
 0x17a   : > { %2607 = vmatpush3.bf16.msra.mxu1 %v2826_v37  ;;  %1725 = vmatprep.mubr.bf16.mxu1 %v888_v50 }
 0x17b   : > { %2674 = vmatprep.mubr.msk.bf16.mxu0 %vm2427_vm14, %v2428_v13  ;;  %2608 = vmatprep.subr.bf16.mxu1 %v2827_v45 }
 0x17c   : > { %2675 = vmatmul.mubr.msk.bf16.vlgmr.msra.gmra.mrb[64].mxu0 %vm3271_vm6, %v2433_v24 }
 0x17d   : > { %2678 = vmatprep.mubr.msk.bf16.mxu0 %vm3304_vm9, %v2438_v6 }
 0x17e   : > { %2609 = vmatpush3.bf16.msra.mxu1 %v2828_v44 }
 0x17f   : > { %2682 = vmatprep.subr.bf16.mxu1 %v2829_v38 }
 0x181   : > { %2410 = vmatmul.mubr.msk.bf16.vlgmr.msra.gmra.mrb[48].mxu1 %vm2388_vm3, %v2409_v10 }
 0x182   : > { %1733 = vmatprep.mubr.bf16.mxu1 %v897_v39  ;;  %2683 = vmatpush3.bf16.msra.mxu1 %v2829_v38 }
 0x183   : > { %2684 = vmatprep.subr.bf16.mxu1 %v2830_v23 }
 0x184   : > { %2679 = vmatmul.mubr.msk.bf16.gmra.mrb[68].mxu0 %vm3332_vm12, %v2443_v28 }
 0x186   : > { %2685 = vmatpush3.bf16.msra.mxu1 %v2830_v23 }
 0x187   : > { %2686 = vmatprep.subr.bf16.mxu1 %v2831_v20 }
 0x189   : > { %2415 = vmatmul.mubr.msk.bf16.gmra.mrb[52].mxu1 %vm3271_vm6, %v2414_v51 }
 0x18a   : > { %1741 = vmatprep.mubr.bf16.mxu1 %v906_v59  ;;  %2687 = vmatpush3.bf16.msra.mxu1 %v2831_v20 }
 0x18b   : > { %2688 = vmatprep.subr.bf16.mxu1 %v2832_v36 }
 0x18e   : > { %2689 = vmatpush3.bf16.msra.mxu1 %v2832_v36 }
 0x18f   : > { %2690 = vmatprep.subr.bf16.mxu1 %v2833_v41 }
 0x191   : > { %2420 = vmatmul.mubr.msk.bf16.gmra.mrb[56].mxu1 %vm3304_vm9, %v2419_v27  ;;  %v2313_v27 = vld [vmem:[%s3764_s4 + $0x1] ss:$0 sm:$0xff] }
 0x192   : > { %1749 = vmatprep.mubr.bf16.mxu1 %v915_v19  ;;  %2691 = vmatpush3.bf16.msra.mxu1 %v2833_v41 }
 0x193   : > { %2692 = vmatprep.subr.bf16.mxu1 %v2834_v33 }
 0x196   : > { %2693 = vmatpush3.bf16.msra.mxu1 %v2834_v33 }
 0x197   : > { %2694 = vmatprep.subr.bf16.mxu1 %v2835_v3 }
 0x199   : > { %2425 = vmatmul.mubr.msk.bf16.gmra.mrb[60].mxu1 %vm3332_vm12, %v2424_v52 }
 0x19a   : > { %2695 = vmatpush3.bf16.msra.mxu1 %v2835_v3 }
 0x19b   : > { %2696 = vmatprep.subr.bf16.mxu1 %v2836_v54 }
 0x19e   : > { %2697 = vmatpush3.bf16.msra.mxu1 %v2836_v54 }
 0x1f4   : > { %v2490_v61 = vpop.f32.mrb[0].mxu1 }
 0x1f5   : > { %v2491_v31 = vpop.f32.mrb[1].mxu1 }
 0x1f6   : > { %v2492_v22 = vadd.f32 %v2491_v31, %v2490_v61  ;;  %v2493_v16 = vpop.f32.mrb[2].mxu1 }
 0x1f7   : > { %v2494_v30 = vpop.f32.mrb[3].mxu1 }
 0x1f8   : > { %v2495_v39 = vadd.f32 %v2494_v30, %v2493_v16  ;;  %v1533_v32 = vadd.f32 %v2492_v22, %v2313_v27 }
 0x1fa   : > { %v1536_v48 = vadd.f32 %v2495_v39, %v2313_v27 }
 0x1fc   : > { %v2496_v42 = vpop.f32.mrb[4].mxu1 }
 0x1fd   : > { %v2497_v24 = vpop.f32.mrb[5].mxu1 }
 0x1fe   : > { %v2498_v26 = vadd.f32 %v2497_v24, %v2496_v42  ;;  %v2499_v51 = vpop.f32.mrb[6].mxu1 }
 0x1ff   : > { %v2500_v56 = vpop.f32.mrb[7].mxu1 }
 0x200   : > { %v2501_v58 = vadd.f32 %v2500_v56, %v2499_v51  ;;  %v1541_v43 = vadd.f32 %v2498_v26, %v2313_v27 }
 0x202   : > { %v1544_v46 = vadd.f32 %v2501_v58, %v2313_v27 }
 0x204   : > { %v2502_v49 = vpop.f32.mrb[8].mxu1 }
 0x205   : > { %v2503_v60 = vpop.f32.mrb[9].mxu1 }
 0x206   : > { %v2504_v8 = vadd.f32 %v2503_v60, %v2502_v49  ;;  %v2505_v59 = vpop.f32.mrb[10].mxu1 }
 0x207   : > { %v2506_v63 = vpop.f32.mrb[11].mxu1 }
 0x208   : > { %v2507_v1 = vadd.f32 %v2506_v63, %v2505_v59  ;;  %v1549_v38 = vadd.f32 %v2504_v8, %v2313_v27 }
 0x20a   : > { %v1552_v41 = vadd.f32 %v2507_v1, %v2313_v27 }
 0x20c   : > { %v2508_v2 = vpop.f32.mrb[12].mxu1 }
 0x20d   : > { %v2509_v5 = vpop.f32.mrb[13].mxu1 }
 0x20e   : > { %v2510_v40 = vadd.f32 %v2509_v5, %v2508_v2  ;;  %v2511_v6 = vpop.f32.mrb[14].mxu1 }
 0x20f   : > { %v2512_v12 = vpop.f32.mrb[15].mxu1 }
 0x210   : > { %v2513_v15 = vadd.f32 %v2512_v12, %v2511_v6  ;;  %v1557_v22 = vadd.f32 %v2510_v40, %v2313_v27 }
 0x212   : > { %v1560_v42 = vadd.f32 %v2513_v15, %v2313_v27 }
 0x214   : > { %v2530_v29 = vpop.f32.mrb[16].mxu1 }
 0x215   : > { %v2531_v17 = vpop.f32.mrb[17].mxu1 }
 0x216   : > { %v2532_v47 = vadd.f32 %v2531_v17, %v2530_v29  ;;  %v2533_v34 = vpop.f32.mrb[18].mxu1 }
 0x217   : > { %v2534_v35 = vpop.f32.mrb[19].mxu1 }
 0x218   : > { %v1598_v9 = vadd.f32 %v2532_v47, %v1533_v32  ;;  %v2535_v19 = vadd.f32 %v2534_v35, %v2533_v34 }
 0x21a   : > { %v1601_v55 = vadd.f32 %v2535_v19, %v1536_v48 }
 0x21c   : > { %v2536_v53 = vpop.f32.mrb[20].mxu1 }
 0x21d   : > { %v2537_v37 = vpop.f32.mrb[21].mxu1 }
 0x21e   : > { %v2538_v45 = vadd.f32 %v2537_v37, %v2536_v53  ;;  %v2539_v28 = vpop.f32.mrb[22].mxu1 }
 0x21f   : > { %v2540_v62 = vpop.f32.mrb[23].mxu1 }
 0x220   : > { %v1606_v50 = vadd.f32 %v2538_v45, %v1541_v43  ;;  %v2541_v10 = vadd.f32 %v2540_v62, %v2539_v28 }
 0x222   : > { %v1609_v13 = vadd.f32 %v2541_v10, %v1544_v46 }
 0x224   : > { %v2542_v52 = vpop.f32.mrb[24].mxu1 }
 0x225   : > { %v2543_v44 = vpop.f32.mrb[25].mxu1 }
 0x226   : > { %v2544_v23 = vadd.f32 %v2543_v44, %v2542_v52  ;;  %v2545_v20 = vpop.f32.mrb[26].mxu1 }
 0x227   : > { %v2546_v36 = vpop.f32.mrb[27].mxu1 }
 0x228   : > { %v1614_v33 = vadd.f32 %v2544_v23, %v1549_v38  ;;  %v2547_v3 = vadd.f32 %v2546_v36, %v2545_v20 }
 0x22a   : > { %v1617_v54 = vadd.f32 %v2547_v3, %v1552_v41 }
 0x22c   : > { %v2548_v61 = vpop.f32.mrb[28].mxu1 }
 0x22d   : > { %v2549_v31 = vpop.f32.mrb[29].mxu1 }
 0x22e   : > { %v2550_v16 = vadd.f32 %v2549_v31, %v2548_v61  ;;  %v2551_v30 = vpop.f32.mrb[30].mxu1 }
 0x22f   : > { %v2552_v39 = vpop.f32.mrb[31].mxu1 }
 0x230   : > { %v1622_v24 = vadd.f32 %v2550_v16, %v1557_v22  ;;  %v2553_v26 = vadd.f32 %v2552_v39, %v2551_v30 }
 0x232   : > { %v1625_v51 = vadd.f32 %v2553_v26, %v1560_v42 }
 0x234   : > { %v2570_v56 = vpop.f32.mrb[32].mxu1 }
 0x235   : > { %v2571_v58 = vpop.f32.mrb[33].mxu1 }
 0x236   : > { %v2572_v49 = vadd.f32 %v2571_v58, %v2570_v56  ;;  %v2573_v60 = vpop.f32.mrb[34].mxu1 }
 0x237   : > { %v2574_v8 = vpop.f32.mrb[35].mxu1 }
 0x238   : > { %v1663_v59 = vadd.f32 %v2572_v49, %v1598_v9  ;;  %v2575_v63 = vadd.f32 %v2574_v8, %v2573_v60 }
 0x23a   : > { %v1666_v1 = vadd.f32 %v2575_v63, %v1601_v55 }
 0x23c   : > { %v2576_v2 = vpop.f32.mrb[36].mxu1 }
 0x23d   : > { %v2577_v5 = vpop.f32.mrb[37].mxu1 }
 0x23e   : > { %v2578_v6 = vadd.f32 %v2577_v5, %v2576_v2  ;;  %v2579_v12 = vpop.f32.mrb[38].mxu1 }
 0x23f   : > { %v2580_v40 = vpop.f32.mrb[39].mxu1 }
 0x240   : > { %v1671_v29 = vadd.f32 %v2578_v6, %v1606_v50  ;;  %v2581_v17 = vadd.f32 %v2580_v40, %v2579_v12 }
 0x242   : > { %v1674_v32 = vadd.f32 %v2581_v17, %v1609_v13 }
 0x244   : > { %v2582_v15 = vpop.f32.mrb[40].mxu1 }
 0x245   : > { %v2583_v27 = vpop.f32.mrb[41].mxu1 }
 0x246   : > { %v2584_v47 = vadd.f32 %v2583_v27, %v2582_v15  ;;  %v2585_v34 = vpop.f32.mrb[42].mxu1 }
 0x247   : > { %v2586_v35 = vpop.f32.mrb[43].mxu1 }
 0x248   : > { %v1679_v48 = vadd.f32 %v2584_v47, %v1614_v33  ;;  %v2587_v19 = vadd.f32 %v2586_v35, %v2585_v34 }
 0x24a   : > { %v1682_v53 = vadd.f32 %v2587_v19, %v1617_v54 }
 0x24c   : > { %v2588_v37 = vpop.f32.mrb[44].mxu1 }
 0x24d   : > { %v2589_v9 = vpop.f32.mrb[45].mxu1 }
 0x24e   : > { %v2590_v43 = vadd.f32 %v2589_v9, %v2588_v37  ;;  %v2591_v55 = vpop.f32.mrb[46].mxu1 }
 0x24f   : > { %v2592_v45 = vpop.f32.mrb[47].mxu1  ;;  %v2676_v28 = vpop.f32.mrb[64].mxu0 }
 0x250   : > { %v1687_v62 = vadd.f32 %v2590_v43, %v1622_v24  ;;  %v2593_v46 = vadd.f32 %v2592_v45, %v2591_v55  ;;  %v1792_v10 = vpop.f32.mrb[65].mxu0 }
 0x251   : > { %v2677_v50 = vpop.f32.mrb[66].mxu0 }
 0x252   : > { %v1690_v52 = vadd.f32 %v2593_v46, %v1625_v51  ;;  %v1795_v13 = vpop.f32.mrb[67].mxu0 }
 0x254   : > { %v2610_v44 = vpop.f32.mrb[48].mxu1 }
 0x255   : > { %v2611_v38 = vpop.f32.mrb[49].mxu1 }
 0x256   : > { %v2612_v23 = vadd.f32 %v2611_v38, %v2610_v44  ;;  %v2613_v20 = vpop.f32.mrb[50].mxu1 }
 0x257   : > { %v2614_v36 = vpop.f32.mrb[51].mxu1  ;;  %v2680_v41 = vpop.f32.mrb[68].mxu0 }
 0x258   : > { %v1728_v33 = vadd.f32 %v2612_v23, %v1663_v59  ;;  %v2615_v3 = vadd.f32 %v2614_v36, %v2613_v20  ;;  %v1808_v54 = vpop.f32.mrb[69].mxu0 }
 0x259   : > { %v2681_v61 = vpop.f32.mrb[70].mxu0 }
 0x25a   : > { %v1793_v31 = vadd.f32 %v1792_v10, %v1728_v33  ;;  %v1731_v22 = vadd.f32 %v2615_v3, %v1666_v1  ;;  %v1811_v16 = vpop.f32.mrb[71].mxu0 }
 0x25c   : > { %v1796_v30 = vadd.f32 %v1795_v13, %v1731_v22  ;;  %v2616_v39 = vpop.f32.mrb[52].mxu1 }
 0x25d   : > { %v2617_v42 = vpop.f32.mrb[53].mxu1 }
 0x25e   : > { %v2618_v24 = vadd.f32 %v2617_v42, %v2616_v39  ;;  %v2619_v26 = vpop.f32.mrb[54].mxu1  ;;  %v1823_v51 = vpack.c.bf16 %v1796_v30, %v1793_v31 }
 0x25f   : > { %v2620_v56 = vpop.f32.mrb[55].mxu1 }
 0x260   : > { %v1736_v58 = vadd.f32 %v2618_v24, %v1671_v29  ;;  %v2621_v49 = vadd.f32 %v2620_v56, %v2619_v26  ;;  %2698 = vmatprep.mubr.bf16.mxu1 %v1823_v51 }
 0x262   : > { %v1801_v60 = vadd.f32 %v2676_v28, %v1736_v58  ;;  %v1739_v8 = vadd.f32 %v2621_v49, %v1674_v32 }
 0x264   : > { %v1804_v63 = vadd.f32 %v2677_v50, %v1739_v8  ;;  %v2622_v59 = vpop.f32.mrb[56].mxu1 }
 0x265   : > { %v2623_v2 = vpop.f32.mrb[57].mxu1 }
 0x266   : > { %v1824_v5 = vpack.c.bf16 %v1804_v63, %v1801_v60  ;;  %v2624_v6 = vadd.f32 %v2623_v2, %v2622_v59  ;;  %v2625_v12 = vpop.f32.mrb[58].mxu1 }
 0x267   : > { %v2626_v1 = vpop.f32.mrb[59].mxu1 }
 0x268   : > { %v1744_v40 = vadd.f32 %v2624_v6, %v1679_v48  ;;  %v2627_v17 = vadd.f32 %v2626_v1, %v2625_v12  ;;  %2699 = vmatmul.mubr.bf16.vlgmr.msra.gmra.mrb[64].mxu1 %v1824_v5  ;;  %v3534_v48 = vld [vmem:[%s3764_s4 + $0x2] ss:$0 sm:$0xff] }
 0x26a   : > { %v1809_v15 = vadd.f32 %v1808_v54, %v1744_v40  ;;  %v1747_v27 = vadd.f32 %v2627_v17, %v1682_v53  ;;  %v282_v17 = vsub.s32 1, %v3060_v57 }
 0x26c   : > { %v1812_v47 = vadd.f32 %v1811_v16, %v1747_v27  ;;  %v2628_v34 = vpop.f32.mrb[60].mxu1 }
 0x26d   : > { %v2629_v35 = vpop.f32.mrb[61].mxu1 }
 0x26e   : > { %v2630_v29 = vadd.f32 %v2629_v35, %v2628_v34  ;;  %v2631_v19 = vpop.f32.mrb[62].mxu1  ;;  %v1825_v37 = vpack.c.bf16 %v1812_v47, %v1809_v15 }
 0x26f   : > { %v2632_v9 = vpop.f32.mrb[63].mxu1 }
 0x270   : > { %v1752_v32 = vadd.f32 %v2630_v29, %v1687_v62  ;;  %v2633_v43 = vadd.f32 %v2632_v9, %v2631_v19  ;;  %2702 = vmatprep.mubr.bf16.mxu1 %v1825_v37 }
 0x272   : > { %v1817_v55 = vadd.f32 %v2680_v41, %v1752_v32  ;;  %v1755_v45 = vadd.f32 %v2633_v43, %v1690_v52 }
 0x274   : > { %v1820_v28 = vadd.f32 %v2681_v61, %v1755_v45 }
 0x276   : > { %v1826_v46 = vpack.c.bf16 %v1820_v28, %v1817_v55  ;;  %v2853_v28 = vld [vmem:[%s3764_s4] ss:$4 sm:$0x3] }
 0x278   : > { %2703 = vmatmul.mubr.bf16.gmra.mrb[68].mxu1 %v1826_v46  ;;  %v3597_v46 = vrot.slane %v2853_v28, %v282_v17 }
 0x33b   : > { %v2700_v53 = vpop.f32.mrb[64].mxu1 }
 0x33c   : > { %v3537_v10 = vadd.f32 %v2700_v53, %v3534_v48  ;;  %v1930_v50 = vpop.f32.mrb[65].mxu1 }
 0x33d   : > { %v3540_v13 = vadd.f32 %v3534_v48, %v1930_v50  ;;  %v2701_v62 = vpop.f32.mrb[66].mxu1 }
 0x33e   : > { %v1971_v44 = vmul.f32 0.70710677, %v3537_v10  ;;  %v3544_v52 = vadd.f32 %v2701_v62, %v3534_v48  ;;  %v1933_v38 = vpop.f32.mrb[67].mxu1 }
 0x33f   : > { %v1969_v23 = vmul.f32 0.70710677, %v3540_v13  ;;  %v3548_v20 = vadd.f32 %v3534_v48, %v1933_v38 }
 0x340   : > { %v3550_v36 = vclamps-f32 %v1971_v44, 4.0  ;;  %v1972_v41 = vmul.f32 0.70710677, %v3544_v52 }
 0x341   : > { %v3553_v33 = vclamps-f32 %v1969_v23, 4.0  ;;  %v1970_v3 = vmul.f32 0.70710677, %v3548_v20 }
 0x342   : > { %v3558_v54 = vmul.f32 %v3550_v36, %v3550_v36  ;;  %v3560_v61 = vclamps-f32 %v1972_v41, 4.0 }
 0x343   : > { %v3564_v31 = vmul.f32 %v3553_v33, %v3553_v33  ;;  %v3566_v22 = vclamps-f32 %v1970_v3, 4.0 }
 0x344   : > { %v2003_v16 = vmul.f32 0.00022905065, %v3558_v54  ;;  %v2067_v30 = vmul.f32 -1.1791603e-07, %v3558_v54  ;;  %v3572_v39 = vmul.f32 %v3560_v61, %v3560_v61 }
 0x345   : > { %v2001_v42 = vmul.f32 0.00022905065, %v3564_v31  ;;  %v2065_v24 = vmul.f32 -1.1791603e-07, %v3564_v31  ;;  %v3578_v26 = vmul.f32 %v3566_v22, %v3566_v22 }
 0x346   : > { %v2011_v51 = vadd.f32 0.003408291, %v2003_v16  ;;  %v2075_v56 = vadd.f32 2.3547966e-05, %v2067_v30  ;;  %v2004_v58 = vmul.f32 0.00022905065, %v3572_v39 }
 0x347   : > { %v2073_v49 = vadd.f32 2.3547966e-05, %v2065_v24  ;;  %v2068_v60 = vmul.f32 -1.1791603e-07, %v3572_v39  ;;  %v2009_v63 = vadd.f32 0.003408291, %v2001_v42 }
 0x348   : > { %v2083_v8 = vmul.f32 %v2075_v56, %v3558_v54  ;;  %v2002_v59 = vmul.f32 0.00022905065, %v3578_v26  ;;  %v2019_v2 = vmul.f32 %v2011_v51, %v3558_v54  ;;  %v2066_v12 = vmul.f32 -1.1791603e-07, %v3578_v26 }
 0x349   : > { %v2081_v5 = vmul.f32 %v2073_v49, %v3564_v31  ;;  %v2076_v6 = vadd.f32 2.3547966e-05, %v2068_v60  ;;  %v2012_v40 = vadd.f32 0.003408291, %v2004_v58  ;;  %v2017_v35 = vmul.f32 %v2009_v63, %v3564_v31 }
 0x34a   : > { %v2091_v1 = vadd.f32 0.0010179626, %v2083_v8  ;;  %v2074_v47 = vadd.f32 2.3547966e-05, %v2066_v12  ;;  %v2010_v29 = vadd.f32 0.003408291, %v2002_v59  ;;  %v3607_v58 = vadd.f32 %v3074_v0, %v3597_v46 }
 0x34b   : > { %v2089_v15 = vadd.f32 0.0010179626, %v2081_v5  ;;  %v2084_v27 = vmul.f32 %v2076_v6, %v3572_v39  ;;  %v2704_v19 = vpop.f32.mrb[68].mxu1  ;;  %v2027_v37 = vadd.f32 0.050955694, %v2019_v2  ;;  %v2020_v57 = vmul.f32 %v2012_v40, %v3572_v39 }
 0x34c   : > { %v2099_v34 = vmul.f32 %v2091_v1, %v3558_v54  ;;  %v2082_v43 = vmul.f32 %v2074_v47, %v3578_v26  ;;  %v1946_v55 = vpop.f32.mrb[69].mxu1  ;;  %v2025_v38 = vadd.f32 0.050955694, %v2017_v35  ;;  %v2018_v23 = vmul.f32 %v2010_v29, %v3578_v26 }
 0x34d   : > { %v2097_v9 = vmul.f32 %v2089_v15, %v3564_v31  ;;  %v2092_v32 = vadd.f32 0.0010179626, %v2084_v27  ;;  %v2705_v41 = vpop.f32.mrb[70].mxu1  ;;  %v2035_v3 = vmul.f32 %v2027_v37, %v3558_v54  ;;  %v2028_v56 = vadd.f32 0.050955694, %v2020_v57 }
 0x34e   : > { %v2107_v45 = vadd.f32 0.01407047, %v2099_v34  ;;  %v2090_v62 = vadd.f32 0.0010179626, %v2082_v43  ;;  %v1949_v24 = vpop.f32.mrb[71].mxu1  ;;  %v3612_v63 = vadd.f32 %v3080_v7, %v3597_v46  ;;  %v2033_v2 = vmul.f32 %v2025_v38, %v3564_v31 }
 0x34f   : > { %v2105_v53 = vadd.f32 0.01407047, %v2097_v9  ;;  %v2100_v50 = vmul.f32 %v2092_v32, %v3572_v39  ;;  %v2026_v5 = vadd.f32 0.050955694, %v2018_v23  ;;  %v2043_v6 = vadd.f32 0.18520832, %v2035_v3 }
 0x350   : > { %v2115_v44 = vmul.f32 %v2107_v45, %v3558_v54  ;;  %v2098_v42 = vmul.f32 %v2090_v62, %v3578_v26  ;;  %v3619_v40 = vmul.f32 0.5, %v3537_v10  ;;  %v2036_v15 = vmul.f32 %v2028_v56, %v3572_v39 }
 0x351   : > { %v2113_v16 = vmul.f32 %v2105_v53, %v3564_v31  ;;  %v2108_v30 = vadd.f32 0.01407047, %v2100_v50  ;;  %v3623_v7 = vadd.f32 %v2704_v19, %v3534_v48  ;;  %v3627_v35 = vadd.f32 %v3534_v48, %v1946_v55 }
 0x352   : > { %v2123_v51 = vadd.f32 0.11098505, %v2115_v44  ;;  %v2106_v8 = vadd.f32 0.01407047, %v2098_v42  ;;  %v2041_v37 = vadd.f32 0.18520832, %v2033_v2  ;;  %v2034_v9 = vmul.f32 %v2026_v5, %v3578_v26 }
 0x353   : > { %v2121_v49 = vadd.f32 0.11098505, %v2113_v16  ;;  %v2116_v60 = vmul.f32 %v2108_v30, %v3572_v39  ;;  %v1975_v10 = vmul.f32 0.70710677, %v3623_v7  ;;  %v2051_v32 = vmul.f32 %v2043_v6, %v3558_v54 }
 0x354   : > { %v2131_v59 = vmul.f32 %v2123_v51, %v3558_v54  ;;  %v2114_v0 = vmul.f32 %v2106_v8, %v3578_v26  ;;  %v1973_v55 = vmul.f32 0.70710677, %v3627_v35  ;;  %v3639_v53 = vadd.f32 %v2705_v41, %v3534_v48 }
 0x355   : > { %v2129_v12 = vmul.f32 %v2121_v49, %v3564_v31  ;;  %v2124_v1 = vadd.f32 0.11098505, %v2116_v60  ;;  %v3635_v28 = vclamps-f32 %v1975_v10, 4.0  ;;  %v2044_v62 = vadd.f32 0.18520832, %v2036_v15 }
 0x356   : > { %v2139_v17 = vadd.f32 0.49746925, %v2131_v59  ;;  %v2122_v34 = vadd.f32 0.11098505, %v2114_v0  ;;  %v3646_v3 = vclamps-f32 %v1973_v55, 4.0  ;;  %v2049_v42 = vmul.f32 %v2041_v37, %v3564_v31 }
 0x357   : > { %v2137_v27 = vadd.f32 0.49746925, %v2129_v12  ;;  %v2132_v47 = vmul.f32 %v2124_v1, %v3572_v39  ;;  %v3644_v23 = vmul.f32 %v3635_v28, %v3635_v28  ;;  %v1976_v41 = vmul.f32 0.70710677, %v3639_v53 }
 0x358   : > { %v2147_v29 = vmul.f32 %v2139_v17, %v3558_v54  ;;  %v2130_v45 = vmul.f32 %v2122_v34, %v3578_v26  ;;  %v2042_v54 = vadd.f32 0.18520832, %v2034_v9  ;;  %v3654_v56 = vmul.f32 %v3646_v3, %v3646_v3 }
 0x359   : > { %v2145_v43 = vmul.f32 %v2137_v27, %v3564_v31  ;;  %v2140_v19 = vadd.f32 0.49746925, %v2132_v47  ;;  %v2071_v51 = vmul.f32 -1.1791603e-07, %v3644_v23  ;;  %v3657_v49 = vadd.f32 %v3534_v48, %v1949_v24 }
 0x35a   : > { %v2155_v57 = vadd.f32 1.0, %v2147_v29  ;;  %v2138_v38 = vadd.f32 0.49746925, %v2130_v45  ;;  %v2007_v8 = vmul.f32 0.00022905065, %v3644_v23  ;;  %v3660_v59 = vclamps-f32 %v1976_v41, 4.0 }
 0x35b   : > { %v2153_v50 = vadd.f32 1.0, %v2145_v43  ;;  %v2148_v44 = vmul.f32 %v2140_v19, %v3572_v39  ;;  %v2059_v2 = vadd.f32 1.1283791, %v2051_v32  ;;  %v2052_v5 = vmul.f32 %v2044_v62, %v3572_v39 }
 0x35c   : > { %2837 = vrcp.f32 %v2155_v57  ;;  %v2146_v30 = vmul.f32 %v2138_v38, %v3578_v26  ;;  %v2050_v31 = vmul.f32 %v2042_v54, %v3578_v26  ;;  %v2079_v6 = vadd.f32 2.3547966e-05, %v2071_v51 }
 0x35d   : > { %2839 = vrcp.f32 %v2153_v50  ;;  %v2156_v16 = vadd.f32 1.0, %v2148_v44  ;;  %v2005_v12 = vmul.f32 0.00022905065, %v3654_v56  ;;  %v2069_v1 = vmul.f32 -1.1791603e-07, %v3654_v56 }
 0x35e   : > { %v2154_v60 = vadd.f32 1.0, %v2146_v30  ;;  %v3668_v48 = vmul.f32 %v3660_v59, %v3660_v59  ;;  %v1961_v24 = vmul.f32 0.5, %v3540_v13  ;;  %v2057_v0 = vadd.f32 1.1283791, %v2049_v42 }
 0x35f   : > { %2841 = vrcp.f32 %v2156_v16  ;;  %v2087_v17 = vmul.f32 %v2079_v6, %v3644_v23  ;;  %v1974_v15 = vmul.f32 0.70710677, %v3657_v49  ;;  %v513_v39 = vadd.f32 %v3084_v11, %v3597_v46 }
 0x360   : > { %2843 = vrcp.f32 %v2154_v60  ;;  %v2015_v26 = vadd.f32 0.003408291, %v2007_v8  ;;  %v2077_v27 = vadd.f32 2.3547966e-05, %v2069_v1  ;;  %v2072_v47 = vmul.f32 -1.1791603e-07, %v3668_v48 }
 0x361   : > { %v2163_v34 = vmul.f32 %v3550_v36, %v2059_v2  ;;  %v1964_v29 = vmul.f32 0.5, %v3544_v52  ;;  %v2060_v37 = vadd.f32 1.1283791, %v2052_v5  ;;  %v2095_v9 = vadd.f32 0.0010179626, %v2087_v17 }
 0x362   : > { %v2058_v10 = vadd.f32 1.1283791, %v2050_v31  ;;  %v2013_v13 = vadd.f32 0.003408291, %v2005_v12  ;;  %v2085_v32 = vmul.f32 %v2077_v27, %v3654_v56  ;;  %v2080_v43 = vadd.f32 2.3547966e-05, %v2072_v47 }
 0x363   : > { %v2161_v45 = vmul.f32 %v3553_v33, %v2057_v0  ;;  %v1962_v11 = vmul.f32 0.5, %v3548_v20  ;;  %v2103_v57 = vmul.f32 %v2095_v9, %v3644_v23  ;;  %v3682_v55 = vclamps-f32 %v1974_v15, 4.0 }
 0x364   : > { %v2023_v52 = vmul.f32 %v2015_v26, %v3644_v23  ;;  %v2093_v62 = vadd.f32 0.0010179626, %v2085_v32  ;;  %v2008_v44 = vmul.f32 0.00022905065, %v3668_v48  ;;  %v2164_v54 = vmul.f32 %v3560_v61, %v2060_v37 }
 0x365   : > { %v2111_v16 = vadd.f32 0.01407047, %v2103_v57  ;;  %v2088_v30 = vmul.f32 %v2080_v43, %v3668_v48  ;;  %v2162_v41 = vmul.f32 %v3566_v22, %v2058_v10  ;;  %v2021_v42 = vmul.f32 %v2013_v13, %v3654_v56 }
 0x366   : > { %v2838_v19 = vpop.eup %2837  ;;  %v2101_v51 = vmul.f32 %v2093_v62, %v3654_v56  ;;  %v3695_v5 = vmul.f32 %v3682_v55, %v3682_v55  ;;  %v2031_v6 = vadd.f32 0.050955694, %v2023_v52  ;;  %v2016_v1 = vadd.f32 0.003408291, %v2008_v44 }
 0x367   : > { %v2840_v36 = vpop.eup %2839  ;;  %v2179_v50 = vmul.f32 %v2838_v19, %v2163_v34  ;;  %v2119_v2 = vmul.f32 %v2111_v16, %v3644_v23  ;;  %v2096_v15 = vadd.f32 0.0010179626, %v2088_v30  ;;  %v2029_v47 = vadd.f32 0.050955694, %v2021_v42 }
 0x368   : > { %v2177_v38 = vmul.f32 %v2840_v36, %v2161_v45  ;;  %v2109_v12 = vadd.f32 0.01407047, %v2101_v51  ;;  %v2070_v10 = vmul.f32 -1.1791603e-07, %v3695_v5  ;;  %v2039_v19 = vmul.f32 %v2031_v6, %v3644_v23 }
 0x369   : > { %v2842_v33 = vpop.eup %2841  ;;  %v2187_v20 = vadd.f32 1.0, %v2179_v50  ;;  %v2127_v27 = vadd.f32 0.11098505, %v2119_v2  ;;  %v2024_v57 = vmul.f32 %v2016_v1, %v3668_v48  ;;  %v2006_v36 = vmul.f32 0.00022905065, %v3695_v5 }
 0x36a   : > { %v2185_v60 = vadd.f32 1.0, %v2177_v38  ;;  %v2180_v8 = vmul.f32 %v2842_v33, %v2164_v54  ;;  %v2844_v61 = vpop.eup %2843  ;;  %v2037_v50 = vmul.f32 %v2029_v47, %v3654_v56  ;;  %v2078_v62 = vadd.f32 2.3547966e-05, %v2070_v10 }
 0x36b   : > { %v2195_v31 = vmul.f32 %v2187_v20, %v3619_v40  ;;  %v2178_v17 = vmul.f32 %v2844_v61, %v2162_v41  ;;  %v2117_v40 = vmul.f32 %v2109_v12, %v3654_v56  ;;  %v2135_v13 = vmul.f32 %v2127_v27, %v3644_v23 }
 0x36c   : > { %v2193_v22 = vmul.f32 %v2185_v60, %v1961_v24  ;;  %v2188_v0 = vadd.f32 1.0, %v2180_v8  ;;  %v503_v24 = vadd.f32 %v3078_v4, %v3597_v46  ;;  %v2047_v44 = vadd.f32 0.18520832, %v2039_v19 }
 0x36d   : > { %v2203_v26 = vadd.f32 %v2195_v31, %v3612_v63  ;;  %v2186_v9 = vadd.f32 1.0, %v2178_v17  ;;  %v2125_v32 = vadd.f32 0.11098505, %v2117_v40  ;;  %v2086_v54 = vmul.f32 %v2078_v62, %v3695_v5 }
 0x36e   : > { %v2201_v34 = vadd.f32 %v2193_v22, %v3607_v58  ;;  %v2196_v37 = vmul.f32 %v2188_v0, %v1964_v29  ;;  %v2104_v58 = vmul.f32 %v2096_v15, %v3668_v48  ;;  %v2143_v29 = vadd.f32 0.49746925, %v2135_v13 }
 0x36f   : > { %2211 = vst [vmem:[%s3701_s21 + $0x10] sm:$0xff] %v2203_v26  ;;  %v2194_v43 = vmul.f32 %v2186_v9, %v1962_v11  ;;  %v2133_v45 = vmul.f32 %v2125_v32, %v3654_v56  ;;  %v2032_v33 = vadd.f32 0.050955694, %v2024_v57  ;;  %v2014_v20 = vadd.f32 0.003408291, %v2006_v36 }
 0x370   : > { %2209 = vst [vmem:[%s3701_s21] sm:$0xff] %v2201_v34  ;;  %v2204_v63 = vadd.f32 %v2196_v37, %v513_v39  ;;  %v2112_v52 = vadd.f32 0.01407047, %v2104_v58  ;;  %v2151_v39 = vmul.f32 %v2143_v29, %v3644_v23  ;;  %v2045_v41 = vadd.f32 0.18520832, %v2037_v50 }
 0x371   : > { %v2202_v4 = vadd.f32 %v2194_v43, %v503_v24  ;;  %v2141_v11 = vadd.f32 0.49746925, %v2133_v45  ;;  %v2094_v51 = vadd.f32 0.0010179626, %v2086_v54  ;;  %v2055_v8 = vmul.f32 %v2047_v44, %v3644_v23 }
 0x372   : > { %2212 = vst [vmem:[%s3701_s21 + $0x18] sm:$0xff] %v2204_v63  ;;  %v2120_v38 = vmul.f32 %v2112_v52, %v3668_v48  ;;  %v2159_v16 = vadd.f32 1.0, %v2151_v39  ;;  %v2040_v31 = vmul.f32 %v2032_v33, %v3668_v48  ;;  %v2022_v6 = vmul.f32 %v2014_v20, %v3695_v5 }
 0x373   : > { %2210 = vst [vmem:[%s3701_s21 + $0x8] sm:$0xff] %v2202_v4  ;;  %v2149_v30 = vmul.f32 %v2141_v11, %v3654_v56  ;;  %v2102_v61 = vmul.f32 %v2094_v51, %v3695_v5  ;;  %v2053_v12 = vmul.f32 %v2045_v41, %v3654_v56  ;;  %v2063_v0 = vadd.f32 1.1283791, %v2055_v8 }
 0x374   : > { %v2128_v42 = vadd.f32 0.11098505, %v2120_v38  ;;  %2845 = vrcp.f32 %v2159_v16  ;;  %v2048_v26 = vadd.f32 0.18520832, %v2040_v31  ;;  %v2030_v23 = vadd.f32 0.050955694, %v2022_v6 }
 0x375   : > { %v2157_v60 = vadd.f32 1.0, %v2149_v30  ;;  %v2110_v22 = vadd.f32 0.01407047, %v2102_v61  ;;  %v2061_v27 = vadd.f32 1.1283791, %v2053_v12  ;;  %v2167_v34 = vmul.f32 %v3635_v28, %v2063_v0 }
 0x376   : > { %v2136_v2 = vmul.f32 %v2128_v42, %v3668_v48  ;;  %v2056_v56 = vmul.f32 %v2048_v26, %v3668_v48  ;;  %v2038_v10 = vmul.f32 %v2030_v23, %v3695_v5  ;;  %v1967_v43 = vmul.f32 0.5, %v3623_v7 }
 0x377   : > { %2847 = vrcp.f32 %v2157_v60  ;;  %v2118_v15 = vmul.f32 %v2110_v22, %v3695_v5  ;;  %v2165_v13 = vmul.f32 %v3646_v3, %v2061_v27  ;;  %v529_v29 = vadd.f32 %v3098_v21, %v3597_v46 }
 0x378   : > { %v2144_v1 = vadd.f32 0.49746925, %v2136_v2  ;;  %v2064_v45 = vadd.f32 1.1283791, %v2056_v56  ;;  %v1965_v36 = vmul.f32 0.5, %v3627_v35  ;;  %v519_v50 = vadd.f32 %v3086_v14, %v3597_v46 }
 0x379   : > { %v2126_v40 = vadd.f32 0.11098505, %v2118_v15  ;;  %v1968_v35 = vmul.f32 0.5, %v3639_v53  ;;  %v533_v14 = vadd.f32 %v3106_v25, %v3597_v46  ;;  %v1966_v20 = vmul.f32 0.5, %v3657_v49 }
 0x37a   : > { %v2152_v17 = vmul.f32 %v2144_v1, %v3668_v48  ;;  %v2046_v48 = vadd.f32 0.18520832, %v2038_v10  ;;  %v2168_v62 = vmul.f32 %v3660_v59, %v2064_v45  ;;  %v523_v42 = vadd.f32 %v3094_v18, %v3597_v46 }
 0x37b   : > { %v2134_v37 = vmul.f32 %v2126_v40, %v3695_v5 }
 0x37c   : > { %v2160_v47 = vadd.f32 1.0, %v2152_v17  ;;  %v2054_v39 = vmul.f32 %v2046_v48, %v3695_v5 }
 0x37d   : > { %v2142_v32 = vadd.f32 0.49746925, %v2134_v37 }
 0x37e   : > { %2849 = vrcp.f32 %v2160_v47  ;;  %v2846_v9 = vpop.eup %2845  ;;  %v2062_v54 = vadd.f32 1.1283791, %v2054_v39 }
 0x37f   : > { %v2183_v24 = vmul.f32 %v2846_v9, %v2167_v34  ;;  %v2150_v28 = vmul.f32 %v2142_v32, %v3695_v5 }
 0x380   : > { %v2166_v33 = vmul.f32 %v3682_v55, %v2062_v54 }
 0x381   : > { %v2848_v63 = vpop.eup %2847  ;;  %v2191_v19 = vadd.f32 1.0, %v2183_v24  ;;  %v2158_v3 = vadd.f32 1.0, %v2150_v28 }
 0x382   : > { %v2181_v58 = vmul.f32 %v2848_v63, %v2165_v13 }
 0x383   : > { %v2199_v57 = vmul.f32 %v2191_v19, %v1967_v43  ;;  %2851 = vrcp.f32 %v2158_v3 }
 0x384   : > { %v2189_v4 = vadd.f32 1.0, %v2181_v58 }
 0x385   : > { %v2207_v7 = vadd.f32 %v2199_v57, %v529_v29 }
 0x386   : > { %v2197_v52 = vmul.f32 %v2189_v4, %v1965_v36 }
 0x387   : > { %2215 = vst [vmem:[%s3701_s21 + $0x30] sm:$0xff] %v2207_v7 }
 0x388   : > { %v2850_v21 = vpop.eup %2849  ;;  %v2205_v11 = vadd.f32 %v2197_v52, %v519_v50 }
 0x389   : > { %v2184_v44 = vmul.f32 %v2850_v21, %v2168_v62 }
 0x38a   : > { %2213 = vst [vmem:[%s3701_s21 + $0x20] sm:$0xff] %v2205_v11 }
 0x38b   : > { %v2192_v38 = vadd.f32 1.0, %v2184_v44 }
 0x38d   : > { %v2200_v16 = vmul.f32 %v2192_v38, %v1968_v35  ;;  %v2852_v59 = vpop.eup %2851 }
 0x38e   : > { %v2182_v5 = vmul.f32 %v2852_v59, %v2166_v33 }
 0x38f   : > { %v2208_v30 = vadd.f32 %v2200_v16, %v533_v14 }
 0x390   : > { %v2190_v41 = vadd.f32 1.0, %v2182_v5 }
 0x391   : > { %2216 = vst [vmem:[%s3701_s21 + $0x38] sm:$0xff] %v2208_v30 }
 0x392   : > { %v2198_v51 = vmul.f32 %v2190_v41, %v1966_v20 }
 0x394   : > { %v2206_v53 = vadd.f32 %v2198_v51, %v523_v42 }
 0x396   : > { %2214 = vst [vmem:[%s3701_s21 + $0x28] sm:$0xff] %v2206_v53 }
 0x397 PF: > { %s15_s18 = sadd.s32 1, %s2860_s18  }
 0x398   : > { %p12_p4 = scmp.ge.s32.totalorder %s15_s18, 4  }
 0x39a   :  { %14 = sbr.rel (!%p12_p4) target bundleno = 1 (0x1), region = 70 }

</bundles_post_ra>
